<compile_context>
chip_gen: v6e
topology: v6e:2x2x1
jax: 0.10.0
libtpu: 0.0.40
codegen_flags: <defaults>
</compile_context>

<pallas_src>
import functools

import jax
import jax.numpy as jnp
from jax.experimental import pallas as pl
from jax.experimental.pallas import tpu as pltpu

LANE = 128  # final conv out-channels padded to a full lane width for the MXU N dim


def _post_boundary_kernel(x_ref, w1_ref, b1_ref, w2_ref, b2_ref, o_ref, pad_ref,
                          *, num_layers):
    # x_ref : (Bb, T, C)       bf16  one block of batch elements
    # w1_ref: (L, 5*C, C)      bf16  hidden conv weights, BN scale folded, im2col layout
    # b1_ref: (L, 1, C)        f32   folded BN shifts
    # w2_ref: (3*C, LANE)      bf16  final conv weights, out-channels zero-padded to LANE
    # b2_ref: (1, LANE)        f32   final conv bias (padded)
    # o_ref : (Bb, T, out)     f32   compact (un-padded) output block
    # pad_ref: (Bb, T+4, C)    f32   per-batch-element zero halo of 2 rows top & bottom
    Bb, T, C = x_ref.shape
    out_size = o_ref.shape[2]

    # Zero only the 4 halo rows; the interior rows are fully overwritten every layer.
    # Done every grid step (cheap) instead of pl.when(program_id==0) so correctness
    # does not depend on which TensorCore owns which slice of the parallel batch axis.
    halo = jnp.zeros((Bb, 2, C), pad_ref.dtype)
    pad_ref[:, 0:2, :] = halo
    pad_ref[:, T + 2:T + 4, :] = halo

    pad_ref[:, 2:2 + T, :] = x_ref[...].astype(pad_ref.dtype)

    # Hidden layers: Conv1d(k=5, pad=2, no bias) -> BN(folded) -> ELU.
    # im2col: one (Bb*T, 5C) x (5C, C) bf16 matmul per layer, f32 accumulate.
    for l in range(num_layers):
        cols = jnp.concatenate([pad_ref[:, k:k + T, :] for k in range(5)], axis=-1)
        a = cols.reshape(Bb * T, 5 * C).astype(jnp.bfloat16)
        acc = jnp.dot(a, w1_ref[l], preferred_element_type=jnp.float32)
        acc = acc + b1_ref[l]                                    # (Bb*T, C) + (1, C)
        # ELU(alpha=1); clamp the exp arg so the unselected branch never produces inf.
        # (expm1 would be marginally more accurate near 0; exp-1 kept for lowering safety.)
        h = jnp.where(acc > 0, acc, jnp.exp(jnp.minimum(acc, 0.0)) - 1.0)
        pad_ref[:, 2:2 + T, :] = h.reshape(Bb, T, C)

    # Final layer: Conv1d(k=3, pad=1, bias) -> Identity.
    cols = jnp.concatenate([pad_ref[:, 1 + k:1 + k + T, :] for k in range(3)], axis=-1)
    a = cols.reshape(Bb * T, 3 * C).astype(jnp.bfloat16)
    out = jnp.dot(a, w2_ref[...], preferred_element_type=jnp.float32) + b2_ref[...]
    out = out.reshape(Bb, T, LANE)
    # Store only the real out_size columns -> no (B,T,128) HBM writeback + wrapper slice.
    o_ref[...] = out[:, :, :out_size].astype(o_ref.dtype)


def post_boundary_detector(x, params, *, eps=1e-5, block_b=8):
    """x: (B, T, C) float32 -> logits (B, T, output_size) float32.

    Matches PostBoundaryDetector(input_size=C, output_size, num_layers, causal=False)
    forward pass with BatchNorm in inference mode.
    """
    w1, gamma, beta, mean, var, w2, b2 = params
    B, T, C = x.shape
    L = w1.shape[0]
    out_size = w2.shape[2]

    # Fold BatchNorm (inference) into the bias-less hidden convs:
    #   BN(conv(x)) = conv(x) * scale + shift
    scale = gamma / jnp.sqrt(var + eps)                             # (L, C)
    shift = beta - mean * scale                                     # (L, C)
    # Scale out-channels, lay out as im2col (L, 5*C, C), bf16 MXU operands.
    w1f = (w1 * scale[:, None, None, :]).reshape(L, 5 * C, C).astype(jnp.bfloat16)
    b1f = shift[:, None, :].astype(jnp.float32)                     # (L, 1, C)

    # Final conv: out-channels zero-padded to LANE for the MXU N dim (store stays narrow).
    w2p = jnp.zeros((3, C, LANE), jnp.float32).at[:, :, :out_size].set(w2)
    w2p = w2p.reshape(3 * C, LANE).astype(jnp.bfloat16)
    b2p = jnp.zeros((1, LANE), jnp.float32).at[0, :out_size].set(b2)

    # Pack block_b batch elements per grid step (matmul M = block_b * T).
    Bb = block_b
    B_pad = pl.cdiv(B, Bb) * Bb
    xk = x.astype(jnp.bfloat16)                                     # halve input DMA bytes
    if B_pad != B:
        xk = jnp.pad(xk, ((0, B_pad - B), (0, 0), (0, 0)))

    kernel = functools.partial(_post_boundary_kernel, num_layers=L)

    # Advisory cost estimate for XLA scheduling around the custom call.
    flops = 2 * B_pad * T * (L * 5 * C * C + 3 * C * LANE)
    bytes_accessed = (xk.size * 2 + w1f.size * 2 + b1f.size * 4
                      + w2p.size * 2 + b2p.size * 4 + B_pad * T * out_size * 4)
    cost = pl.CostEstimate(flops=flops, transcendentals=B_pad * T * C * L,
                           bytes_accessed=bytes_accessed)

    # Explicit VMEM budget (lane-padded blocks, double-buffered I/O, resident weights,
    # pad scratch, im2col/accumulator temporaries), capped at v7x's 64-MiB VMEM.
    lane = lambda n: pl.cdiv(n, LANE) * LANE
    est = (2 * Bb * T * lane(C) * 2                   # x blocks (bf16)
           + 2 * Bb * T * lane(out_size) * 4          # out blocks (f32)
           + Bb * (T + 4) * lane(C) * 4               # pad scratch (f32)
           + 2 * (w1f.size * 2 + b1f.size * 4 + w2p.size * 2 + b2p.size * 4)
           + 4 * Bb * T * lane(5 * C) * 4)            # im2col + accumulator temporaries
    vmem_limit = int(min(64 * 1024 * 1024, max(32 * 1024 * 1024, 2 * est)))

    out = pl.pallas_call(
        kernel,
        out_shape=jax.ShapeDtypeStruct((B_pad, T, out_size), jnp.float32),
        grid=(B_pad // Bb,),
        in_specs=[
            pl.BlockSpec((Bb, T, C), lambda b: (b, 0, 0)),          # x: Bb batches / step
            pl.BlockSpec((L, 5 * C, C), lambda b: (0, 0, 0)),       # weights stay resident
            pl.BlockSpec((L, 1, C), lambda b: (0, 0, 0)),
            pl.BlockSpec((3 * C, LANE), lambda b: (0, 0)),
            pl.BlockSpec((1, LANE), lambda b: (0, 0)),
        ],
        out_specs=pl.BlockSpec((Bb, T, out_size), lambda b: (b, 0, 0)),
        scratch_shapes=[pltpu.VMEM((Bb, T + 4, C), jnp.float32)],
        compiler_params=pltpu.CompilerParams(
            dimension_semantics=("parallel",),
            vmem_limit_bytes=vmem_limit),
        cost_estimate=cost,
    )(xk, w1f, b1f, w2p, b2p)

    return out[:B] if B_pad != B else out


def init_params(key, input_size, output_size=2, num_layers=1):
    """Deterministic synthetic parameters (PyTorch-style uniform bounds for convs,
    non-trivial BatchNorm running stats so the fold is actually exercised)."""
    C = input_size
    ks = jax.random.split(key, 7)

    bound1 = 1.0 / jnp.sqrt(C * 5.0)
    w1 = jax.random.uniform(ks[0], (num_layers, 5, C, C), jnp.float32, -bound1, bound1)
    gamma = jax.random.uniform(ks[1], (num_layers, C), jnp.float32, 0.5, 1.5)
    beta = 0.1 * jax.random.normal(ks[2], (num_layers, C), jnp.float32)
    mean = 0.1 * jax.random.normal(ks[3], (num_layers, C), jnp.float32)
    var = jax.random.uniform(ks[4], (num_layers, C), jnp.float32, 0.5, 1.5)

    bound2 = 1.0 / jnp.sqrt(C * 3.0)
    w2 = jax.random.uniform(ks[5], (3, C, output_size), jnp.float32, -bound2, bound2)
    b2 = jax.random.uniform(ks[6], (output_size,), jnp.float32, -bound2, bound2)
    return (w1, gamma, beta, mean, var, w2, b2)


def _ref_forward(x, params, eps=1e-5):
    """Pure-JAX reference (BatchNorm in inference mode, causal=False), f32 HIGHEST."""
    w1, gamma, beta, mean, var, w2, b2 = params
    B, T, C = x.shape
    L = w1.shape[0]
    hi = jax.lax.Precision.HIGHEST

    h = x
    for l in range(L):
        hp = jnp.pad(h, ((0, 0), (2, 2), (0, 0)))
        y = sum(jnp.einsum("bti,io->bto", hp[:, k:k + T, :], w1[l, k], precision=hi)
                for k in range(5))
        sc = gamma[l] / jnp.sqrt(var[l] + eps)
        y = (y - mean[l]) * sc + beta[l]
        h = jax.nn.elu(y)

    hp = jnp.pad(h, ((0, 0), (1, 1), (0, 0)))
    out = sum(jnp.einsum("bti,io->bto", hp[:, k:k + T, :], w2[k], precision=hi)
              for k in range(3)) + b2
    return out


if __name__ == "__main__":
    batch, seq, input_size, output_size = 2, 16, 32, 2

    key = jax.random.PRNGKey(0)
    kx, kp = jax.random.split(key)
    x = jax.random.normal(kx, (batch, seq, input_size), jnp.float32)
    params = init_params(kp, input_size, output_size, num_layers=1)

    out = post_boundary_detector(x, params)
    out = jax.block_until_ready(out)

    ref = _ref_forward(x, params)
    assert out.shape == (batch, seq, output_size)
    # Kernel uses bf16 matmul operands (f32 accumulate); compare against the f32
    # HIGHEST-precision reference with a correspondingly loosened tolerance.
    assert jnp.allclose(out, ref, atol=3e-2, rtol=3e-2), \
        float(jnp.max(jnp.abs(out - ref)))
    print("KERNEL_OK")
</pallas_src>

<mosaic_0001>
module attributes {stable_mosaic.version = 11 : i64} {
  func.func @_post_boundary_kernel(%arg0: i32, %arg1: memref<8x16x32xbf16, #tpu.memory_space<vmem>>, %arg2: memref<1x160x32xbf16, #tpu.memory_space<vmem>>, %arg3: memref<1x1x32xf32, #tpu.memory_space<vmem>>, %arg4: memref<96x128xbf16, #tpu.memory_space<vmem>>, %arg5: memref<1x128xf32, #tpu.memory_space<vmem>>, %arg6: memref<8x16x2xf32, #tpu.memory_space<vmem>>, %arg7: memref<8x20x32xf32, #tpu.memory_space<vmem>>) attributes {dimension_semantics = [#tpu.dimension_semantics<parallel>], iteration_bounds = array<i64: 1>, scalar_prefetch = 0 : i64, scratch_operands = 1 : i64, tpu.core_type = #tpu.core_type<tc>, window_params = [{transform_indices = @transform_0, window_bounds = array<i64: 8, 16, 32>}, {pipeline_mode = #tpu.pipeline_mode<synchronous>, transform_indices = @transform_1, window_bounds = array<i64: 1, 160, 32>}, {pipeline_mode = #tpu.pipeline_mode<synchronous>, transform_indices = @transform_2, window_bounds = array<i64: 1, 1, 32>}, {pipeline_mode = #tpu.pipeline_mode<synchronous>, transform_indices = @transform_3, window_bounds = array<i64: 96, 128>}, {pipeline_mode = #tpu.pipeline_mode<synchronous>, transform_indices = @transform_4, window_bounds = array<i64: 1, 128>}, {transform_indices = @transform_5, window_bounds = array<i64: 8, 16, 2>}]} {
    %cst = arith.constant 0.000000e+00 : f32
    %0 = vector.broadcast %cst : f32 to vector<8x2x32xf32>
    %c0 = arith.constant 0 : index
    %c0_0 = arith.constant 0 : index
    %c0_1 = arith.constant 0 : index
    %1 = vector.load %arg7[%c0, %c0_0, %c0_1] : memref<8x20x32xf32, #tpu.memory_space<vmem>>, vector<8x2x32xf32>
    tpu.vector_store %arg7[%c0, %c0_0, %c0_1], %0 {strides = array<i32>} : memref<8x20x32xf32, #tpu.memory_space<vmem>>, vector<8x2x32xf32>,
    %c0_2 = arith.constant 0 : index
    %c18 = arith.constant 18 : index
    %c0_3 = arith.constant 0 : index
    %2 = vector.load %arg7[%c0_2, %c18, %c0_3] : memref<8x20x32xf32, #tpu.memory_space<vmem>>, vector<8x2x32xf32>
    tpu.vector_store %arg7[%c0_2, %c18, %c0_3], %0 {strides = array<i32>} : memref<8x20x32xf32, #tpu.memory_space<vmem>>, vector<8x2x32xf32>,
    %c0_4 = arith.constant 0 : index
    %c0_5 = arith.constant 0 : index
    %c0_6 = arith.constant 0 : index
    %3 = vector.load %arg1[%c0_4, %c0_5, %c0_6] : memref<8x16x32xbf16, #tpu.memory_space<vmem>>, vector<8x16x32xbf16>
    %4 = arith.extf %3 : vector<8x16x32xbf16> to vector<8x16x32xf32>
    %c0_7 = arith.constant 0 : index
    %c2 = arith.constant 2 : index
    %c0_8 = arith.constant 0 : index
    %5 = vector.load %arg7[%c0_7, %c2, %c0_8] : memref<8x20x32xf32, #tpu.memory_space<vmem>>, vector<8x16x32xf32>
    tpu.vector_store %arg7[%c0_7, %c2, %c0_8], %4 {strides = array<i32>} : memref<8x20x32xf32, #tpu.memory_space<vmem>>, vector<8x16x32xf32>,
    %c0_9 = arith.constant 0 : index
    %c0_10 = arith.constant 0 : index
    %c0_11 = arith.constant 0 : index
    %6 = vector.load %arg7[%c0_9, %c0_10, %c0_11] : memref<8x20x32xf32, #tpu.memory_space<vmem>>, vector<8x16x32xf32>
    %c0_12 = arith.constant 0 : index
    %c1 = arith.constant 1 : index
    %c0_13 = arith.constant 0 : index
    %7 = vector.load %arg7[%c0_12, %c1, %c0_13] : memref<8x20x32xf32, #tpu.memory_space<vmem>>, vector<8x16x32xf32>
    %c0_14 = arith.constant 0 : index
    %c2_15 = arith.constant 2 : index
    %c0_16 = arith.constant 0 : index
    %8 = vector.load %arg7[%c0_14, %c2_15, %c0_16] : memref<8x20x32xf32, #tpu.memory_space<vmem>>, vector<8x16x32xf32>
    %c0_17 = arith.constant 0 : index
    %c3 = arith.constant 3 : index
    %c0_18 = arith.constant 0 : index
    %9 = vector.load %arg7[%c0_17, %c3, %c0_18] : memref<8x20x32xf32, #tpu.memory_space<vmem>>, vector<8x16x32xf32>
    %c0_19 = arith.constant 0 : index
    %c4 = arith.constant 4 : index
    %c0_20 = arith.constant 0 : index
    %10 = vector.load %arg7[%c0_19, %c4, %c0_20] : memref<8x20x32xf32, #tpu.memory_space<vmem>>, vector<8x16x32xf32>
    %11 = tpu.concatenate %6, %7, %8, %9, %10 in 2 : vector<8x16x32xf32>, vector<8x16x32xf32>, vector<8x16x32xf32>, vector<8x16x32xf32>, vector<8x16x32xf32> -> vector<8x16x160xf32>
    %12 = vector.shape_cast %11 : vector<8x16x160xf32> to vector<128x160xf32>
    %13 = arith.truncf %12 : vector<128x160xf32> to vector<128x160xbf16>
    %c0_21 = arith.constant 0 : index
    %c0_22 = arith.constant 0 : index
    %c0_23 = arith.constant 0 : index
    %14 = vector.load %arg2[%c0_21, %c0_22, %c0_23] : memref<1x160x32xbf16, #tpu.memory_space<vmem>>, vector<1x160x32xbf16>
    %15 = vector.shape_cast %14 : vector<1x160x32xbf16> to vector<160x32xbf16>
    %cst_24 = arith.constant dense<0.000000e+00> : vector<128x32xf32>
    %16 = tpu.matmul %13, %15, %cst_24 {dimension_numbers = #tpu.dot_dimension_numbers<[1], [0], [0], [1], [0, 0, 1, 1], [], []>} : vector<128x160xbf16>, vector<160x32xbf16>, vector<128x32xf32> -> vector<128x32xf32>
    %c0_25 = arith.constant 0 : index
    %c0_26 = arith.constant 0 : index
    %c0_27 = arith.constant 0 : index
    %17 = vector.load %arg3[%c0_25, %c0_26, %c0_27] : memref<1x1x32xf32, #tpu.memory_space<vmem>>, vector<1x1x32xf32>
    %18 = vector.shape_cast %17 : vector<1x1x32xf32> to vector<1x32xf32>
    %19 = vector.broadcast %18 : vector<1x32xf32> to vector<128x32xf32>
    %20 = arith.addf %16, %19 : vector<128x32xf32>
    %cst_28 = arith.constant 0.000000e+00 : f32
    %21 = vector.broadcast %cst_28 : f32 to vector<128x32xf32>
    %22 = arith.cmpf ogt, %20, %21 : vector<128x32xf32>
    %cst_29 = arith.constant 0.000000e+00 : f32
    %23 = vector.broadcast %cst_29 : f32 to vector<128x32xf32>
    %24 = arith.minimumf %20, %23 : vector<128x32xf32>
    %25 = math.exp %24 : vector<128x32xf32>
    %cst_30 = arith.constant 1.000000e+00 : f32
    %26 = vector.broadcast %cst_30 : f32 to vector<128x32xf32>
    %27 = arith.subf %25, %26 : vector<128x32xf32>
    %28 = arith.select %22, %20, %27 : vector<128x32xi1>, vector<128x32xf32>
    %29 = vector.shape_cast %28 : vector<128x32xf32> to vector<8x16x32xf32>
    %c0_31 = arith.constant 0 : index
    %c2_32 = arith.constant 2 : index
    %c0_33 = arith.constant 0 : index
    %30 = vector.load %arg7[%c0_31, %c2_32, %c0_33] : memref<8x20x32xf32, #tpu.memory_space<vmem>>, vector<8x16x32xf32>
    tpu.vector_store %arg7[%c0_31, %c2_32, %c0_33], %29 {strides = array<i32>} : memref<8x20x32xf32, #tpu.memory_space<vmem>>, vector<8x16x32xf32>,
    %c0_34 = arith.constant 0 : index
    %c1_35 = arith.constant 1 : index
    %c0_36 = arith.constant 0 : index
    %31 = vector.load %arg7[%c0_34, %c1_35, %c0_36] : memref<8x20x32xf32, #tpu.memory_space<vmem>>, vector<8x16x32xf32>
    %c0_37 = arith.constant 0 : index
    %c2_38 = arith.constant 2 : index
    %c0_39 = arith.constant 0 : index
    %32 = vector.load %arg7[%c0_37, %c2_38, %c0_39] : memref<8x20x32xf32, #tpu.memory_space<vmem>>, vector<8x16x32xf32>
    %c0_40 = arith.constant 0 : index
    %c3_41 = arith.constant 3 : index
    %c0_42 = arith.constant 0 : index
    %33 = vector.load %arg7[%c0_40, %c3_41, %c0_42] : memref<8x20x32xf32, #tpu.memory_space<vmem>>, vector<8x16x32xf32>
    %34 = tpu.concatenate %31, %32, %33 in 2 : vector<8x16x32xf32>, vector<8x16x32xf32>, vector<8x16x32xf32> -> vector<8x16x96xf32>
    %35 = vector.shape_cast %34 : vector<8x16x96xf32> to vector<128x96xf32>
    %36 = arith.truncf %35 : vector<128x96xf32> to vector<128x96xbf16>
    %c0_43 = arith.constant 0 : index
    %c0_44 = arith.constant 0 : index
    %37 = vector.load %arg4[%c0_43, %c0_44] : memref<96x128xbf16, #tpu.memory_space<vmem>>, vector<96x128xbf16>
    %cst_45 = arith.constant dense<0.000000e+00> : vector<128x128xf32>
    %38 = tpu.matmul %36, %37, %cst_45 {dimension_numbers = #tpu.dot_dimension_numbers<[1], [0], [0], [1], [0, 0, 1, 1], [], []>} : vector<128x96xbf16>, vector<96x128xbf16>, vector<128x128xf32> -> vector<128x128xf32>
    %c0_46 = arith.constant 0 : index
    %c0_47 = arith.constant 0 : index
    %39 = vector.load %arg5[%c0_46, %c0_47] : memref<1x128xf32, #tpu.memory_space<vmem>>, vector<1x128xf32>
    %40 = vector.broadcast %39 : vector<1x128xf32> to vector<128x128xf32>
    %41 = arith.addf %38, %40 : vector<128x128xf32>
    %42 = vector.shape_cast %41 : vector<128x128xf32> to vector<8x16x128xf32>
    %43 = vector.extract_strided_slice %42 {offsets = [0, 0, 0], sizes = [8, 16, 2], strides = [1, 1, 1]} : vector<8x16x128xf32> to vector<8x16x2xf32>
    %c0_48 = arith.constant 0 : index
    %c0_49 = arith.constant 0 : index
    %c0_50 = arith.constant 0 : index
    %44 = vector.load %arg6[%c0_48, %c0_49, %c0_50] : memref<8x16x2xf32, #tpu.memory_space<vmem>>, vector<8x16x2xf32>
    tpu.vector_store %arg6[%c0_48, %c0_49, %c0_50], %43 {strides = array<i32>} : memref<8x16x2xf32, #tpu.memory_space<vmem>>, vector<8x16x2xf32>,
    return
  }
  func.func @transform_0(%arg0: i32) -> (i32, i32, i32) {
    %c0_i32 = arith.constant 0 : i32
    %c0_i32_0 = arith.constant 0 : i32
    %c0_i32_1 = arith.constant 0 : i32
    return %arg0, %c0_i32, %c0_i32_0 : i32, i32, i32
  }
  func.func @transform_1(%arg0: i32) -> (i32, i32, i32) {
    %c0_i32 = arith.constant 0 : i32
    %c0_i32_0 = arith.constant 0 : i32
    %c0_i32_1 = arith.constant 0 : i32
    %c0_i32_2 = arith.constant 0 : i32
    return %c0_i32, %c0_i32_0, %c0_i32_1 : i32, i32, i32
  }
  func.func @transform_2(%arg0: i32) -> (i32, i32, i32) {
    %c0_i32 = arith.constant 0 : i32
    %c0_i32_0 = arith.constant 0 : i32
    %c0_i32_1 = arith.constant 0 : i32
    %c0_i32_2 = arith.constant 0 : i32
    return %c0_i32, %c0_i32_0, %c0_i32_1 : i32, i32, i32
  }
  func.func @transform_3(%arg0: i32) -> (i32, i32) {
    %c0_i32 = arith.constant 0 : i32
    %c0_i32_0 = arith.constant 0 : i32
    %c0_i32_1 = arith.constant 0 : i32
    return %c0_i32, %c0_i32_0 : i32, i32
  }
  func.func @transform_4(%arg0: i32) -> (i32, i32) {
    %c0_i32 = arith.constant 0 : i32
    %c0_i32_0 = arith.constant 0 : i32
    %c0_i32_1 = arith.constant 0 : i32
    return %c0_i32, %c0_i32_0 : i32, i32
  }
  func.func @transform_5(%arg0: i32) -> (i32, i32, i32) {
    %c0_i32 = arith.constant 0 : i32
    %c0_i32_0 = arith.constant 0 : i32
    %c0_i32_1 = arith.constant 0 : i32
    return %arg0, %c0_i32, %c0_i32_0 : i32, i32, i32
  }
}

</mosaic_0001>

<bundles_post_ra>
// kernel: tpu_custom_call.1
= control target key start
LH: loop header
LB: loop body
LE: loop exit
PB: predicated region body
PF: predicated region fallthrough
CT: control target
= control target key end

     0   :  { %vm21_vm0 = vcmask 254976   ;;  %v1542_v0 = vmov 0.0   ;;  %vm70_vm1 = vcmask 261120   ;;  %v1543_v4 = vmov 0   ;;  %s1544_s14 = smov 32   ;;  %s1545_s17 = smov 96   ;;  %s1981_s0 = inlined_call_operand.vmem [shape: bf16[8,16,32], index: 0, kind: input, shape index: {}]   ;;  %s1982_s1 = inlined_call_operand.vmem [shape: bf16[1,160,32], index: 1, kind: input, shape index: {}]   ;;  %s1983_s3 = inlined_call_operand.vmem [shape: bf16[96,128], index: 3, kind: input, shape index: {}]   ;;  %s1984_s2 = inlined_call_operand.vmem [shape: f32[1,1,32], index: 2, kind: input, shape index: {}]   ;;  %s1985_s4 = inlined_call_operand.vmem [shape: f32[1,128], index: 4, kind: input, shape index: {}]   ;;  %s1986_s5 = inlined_call_operand.vmem [shape: f32[8,16,2], index: 5, kind: output, shape index: {}]  }
   0x1   :  { %22 = vst.msk [vmem:[#allocation2] sm:$0x3] %vm21_vm0, %v1542_v0  ;;  %v1209_v1 = vld [vmem:[%s1981_s0] sm:$0xff]   ;;  %23 = vst.msk [vmem:[#allocation2 + $0x18] sm:$0x3] %vm21_vm0, %v1542_v0  ;;  %v1240_v2 = vld [vmem:[%s1981_s0 + $0x8] sm:$0xff]   ;;  %536 = vmatprep.subr.bf16.mxu0 %v1543_v4 }
   0x2   :  { %24 = vst.msk [vmem:[#allocation2 + $0x30] sm:$0x3] %vm21_vm0, %v1542_v0  ;;  %25 = vst.msk [vmem:[#allocation2 + $0x48] sm:$0x3] %vm21_vm0, %v1542_v0  ;;  %v1241_v3 = vld [vmem:[%s1981_s0 + $0x10] sm:$0xff]   ;;  %v1210_v5 = vunpack.c.l.bf16 %v1209_v1  ;;  %v1211_v6 = vunpack.c.h.bf16 %v1209_v1  ;;  %v1214_v7 = vunpack.c.l.bf16 %v1240_v2  ;;  %v1215_v8 = vunpack.c.h.bf16 %v1240_v2  ;;  %v1242_v9 = vld [vmem:[%s1981_s0 + $0x18] sm:$0xff]  }
   0x3   :  { %26 = vst.msk [vmem:[#allocation2 + $0x60] sm:$0x3] %vm21_vm0, %v1542_v0  ;;  %27 = vst.msk [vmem:[#allocation2 + $0x78] sm:$0x3] %vm21_vm0, %v1542_v0  ;;  %v1243_v10 = vld [vmem:[%s1981_s0 + $0x20] sm:$0xff]   ;;  %v1244_v11 = vld [vmem:[%s1981_s0 + $0x28] sm:$0xff]   ;;  %v1218_v12 = vunpack.c.l.bf16 %v1241_v3  ;;  %v1219_v13 = vunpack.c.h.bf16 %v1241_v3  ;;  %v1222_v14 = vunpack.c.l.bf16 %v1242_v9  ;;  %v1223_v15 = vunpack.c.h.bf16 %v1242_v9 }
   0x4   :  { %28 = vst.msk [vmem:[#allocation2 + $0x90] sm:$0x3] %vm21_vm0, %v1542_v0  ;;  %29 = vst.msk [vmem:[#allocation2 + $0xa8] sm:$0x3] %vm21_vm0, %v1542_v0  ;;  %v1245_v16 = vld [vmem:[%s1981_s0 + $0x30] sm:$0xff]   ;;  %v1246_v17 = vld [vmem:[%s1981_s0 + $0x38] sm:$0xff]   ;;  %v1226_v18 = vunpack.c.l.bf16 %v1243_v10  ;;  %v1227_v19 = vunpack.c.h.bf16 %v1243_v10  ;;  %v1230_v20 = vunpack.c.l.bf16 %v1244_v11  ;;  %v1231_v21 = vunpack.c.h.bf16 %v1244_v11 }
   0x5   :  { %30 = vst.msk [vmem:[#allocation2 + $0x12] sm:$0x3] %vm21_vm0, %v1542_v0  ;;  %31 = vst.msk [vmem:[#allocation2 + $0x2a] sm:$0x3] %vm21_vm0, %v1542_v0  ;;  %v1494_v22 = vld [vmem:[%s1982_s1 + $0x38] sm:$0xff]   ;;  %v1234_v23 = vunpack.c.l.bf16 %v1245_v16  ;;  %v1235_v24 = vunpack.c.h.bf16 %v1245_v16  ;;  %v1238_v25 = vunpack.c.l.bf16 %v1246_v17  ;;  %v1239_v26 = vunpack.c.h.bf16 %v1246_v17  ;;  %v1495_v27 = vld [vmem:[%s1982_s1 + $0x30] sm:$0xff]  }
   0x6   :  { %32 = vst.msk [vmem:[#allocation2 + $0x42] sm:$0x3] %vm21_vm0, %v1542_v0  ;;  %33 = vst.msk [vmem:[#allocation2 + $0x5a] sm:$0x3] %vm21_vm0, %v1542_v0  ;;  %537 = vmatpush1.bf16.msra.mxu0 %v1494_v22  ;;  %v1496_v28 = vld [vmem:[%s1982_s1 + $0x28] sm:$0xff]   ;;  %v1497_v40 = vld [vmem:[%s1982_s1 + $0x20] sm:$0xff]  }
   0x7   :  { %34 = vst.msk [vmem:[#allocation2 + $0x72] sm:$0x3] %vm21_vm0, %v1542_v0  ;;  %35 = vst.msk [vmem:[#allocation2 + $0x8a] sm:$0x3] %vm21_vm0, %v1542_v0  ;;  %538 = vmatprep.subr.bf16.mxu0 %v1543_v4  ;;  %s1546_s18 = smov 64   ;;  %v1498_v47 = vld [vmem:[%s1982_s1 + $0x18] sm:$0xff]  }
   0x8   :  { %36 = vst.msk [vmem:[#allocation2 + $0xa2] sm:$0x3] %vm21_vm0, %v1542_v0  ;;  %37 = vst.msk [vmem:[#allocation2 + $0xba] sm:$0x3] %vm21_vm0, %v1542_v0  ;;  %v1499_v54 = vld [vmem:[%s1982_s1 + $0x10] sm:$0xff]   ;;  %v1500_v62 = vld [vmem:[%s1982_s1 + $0x8] sm:$0xff]  }
   0x9   :  { %71 = vst.msk [vmem:[#allocation2 + $0x2] sm:$0xff] %vm70_vm1, %v1210_v5  ;;  %72 = vst.msk [vmem:[#allocation2 + $0xa] sm:$0xff] %vm70_vm1, %v1211_v6  ;;  %v1501_v6 = vld [vmem:[%s1982_s1] sm:$0xff]   ;;  %vm375_vm2 = vcmask 523264   ;;  %vm392_vm3 = vcmask 785408  }
   0xa   :  { %73 = vst.msk [vmem:[#allocation2 + $0x1a] sm:$0xff] %vm70_vm1, %v1214_v7  ;;  %74 = vst.msk [vmem:[#allocation2 + $0x22] sm:$0xff] %vm70_vm1, %v1215_v8  ;;  %539 = vmatpush1.bf16.msra.mxu0 %v1495_v27  ;;  %v1503_v22 = vld [vmem:[%s1982_s1 + $0x40] sm:$0xff]  }
   0xb   :  { %75 = vst.msk [vmem:[#allocation2 + $0x32] sm:$0xff] %vm70_vm1, %v1218_v12  ;;  %76 = vst.msk [vmem:[#allocation2 + $0x3a] sm:$0xff] %vm70_vm1, %v1219_v13  ;;  %540 = vmatprep.subr.bf16.mxu0 %v1543_v4 }
   0xc   :  { %77 = vst.msk [vmem:[#allocation2 + $0x4a] sm:$0xff] %vm70_vm1, %v1222_v14  ;;  %78 = vst.msk [vmem:[#allocation2 + $0x52] sm:$0xff] %vm70_vm1, %v1223_v15  ;;  %v1502_v15 = vld [vmem:[%s1982_s1 + $0x48] sm:$0xff]  }
   0xd   :  { %79 = vst.msk [vmem:[#allocation2 + $0x62] sm:$0xff] %vm70_vm1, %v1226_v18  ;;  %80 = vst.msk [vmem:[#allocation2 + $0x6a] sm:$0xff] %vm70_vm1, %v1227_v19 }
   0xe   :  { %81 = vst.msk [vmem:[#allocation2 + $0x7a] sm:$0xff] %vm70_vm1, %v1230_v20  ;;  %82 = vst.msk [vmem:[#allocation2 + $0x82] sm:$0xff] %vm70_vm1, %v1231_v21  ;;  %541 = vmatpush1.bf16.msra.mxu0 %v1496_v28 }
   0xf   :  { %83 = vst.msk [vmem:[#allocation2 + $0x92] sm:$0xff] %vm70_vm1, %v1234_v23  ;;  %84 = vst.msk [vmem:[#allocation2 + $0x9a] sm:$0xff] %vm70_vm1, %v1235_v24  ;;  %542 = vmatprep.subr.bf16.mxu0 %v1543_v4 }
  0x10   :  { %85 = vst.msk [vmem:[#allocation2 + $0xaa] sm:$0xff] %vm70_vm1, %v1238_v25  ;;  %86 = vst.msk [vmem:[#allocation2 + $0xb2] sm:$0xff] %vm70_vm1, %v1239_v26  ;;  %v103_v29 = vld [vmem:[#allocation2 + $0x1] sm:$0xff]  ;;  %v104_v30 = vld [vmem:[#allocation2 + $0x9] sm:$0xff] }
  0x11   :  { %v135_v31 = vld [vmem:[#allocation2 + $0x3] sm:$0xff]  ;;  %v1294_v32 = vpack.i.bf16 %v104_v30, %v103_v29  ;;  %v136_v33 = vld [vmem:[#allocation2 + $0xb] sm:$0xff]  ;;  %v105_v37 = vld [vmem:[#allocation2 + $0x19] sm:$0xff] }
  0x12   :  { %v119_v34 = vld [vmem:[#allocation2 + $0x2] sm:$0xff]  ;;  %v120_v35 = vld [vmem:[#allocation2 + $0xa] sm:$0xff]  ;;  %v1304_v36 = vpack.i.bf16 %v136_v33, %v135_v31  ;;  %v121_v42 = vld [vmem:[#allocation2 + $0x1a] sm:$0xff]  ;;  %543 = vmatpush1.bf16.msra.mxu0 %v1497_v40 }
  0x13   :  { %v106_v38 = vld [vmem:[#allocation2 + $0x21] sm:$0xff]  ;;  %1295 = vrot.lane.b32.xlu0 %v1294_v32, %s1544_s14  ;;  %v1299_v39 = vpack.i.bf16 %v120_v35, %v119_v34  ;;  %v107_v49 = vld [vmem:[#allocation2 + $0x31] sm:$0xff]  ;;  %v108_v50 = vld [vmem:[#allocation2 + $0x39] sm:$0xff]  ;;  %544 = vmatprep.subr.bf16.mxu0 %v1543_v4 }
  0x14   :  { %1305 = vrot.lane.b32.xlu1 %v1304_v36, %s1545_s17  ;;  %v1309_v41 = vpack.i.bf16 %v106_v38, %v105_v37  ;;  %v122_v43 = vld [vmem:[#allocation2 + $0x22] sm:$0xff]  ;;  %v123_v51 = vld [vmem:[#allocation2 + $0x32] sm:$0xff]  ;;  %v124_v52 = vld [vmem:[#allocation2 + $0x3a] sm:$0xff]  ;;  %v1324_v53 = vpack.i.bf16 %v108_v50, %v107_v49 }
  0x15   :  { %v137_v44 = vld [vmem:[#allocation2 + $0x1b] sm:$0xff]  ;;  %v138_v45 = vld [vmem:[#allocation2 + $0x23] sm:$0xff]  ;;  %v1314_v46 = vpack.i.bf16 %v122_v43, %v121_v42  ;;  %v1329_v55 = vpack.i.bf16 %v124_v52, %v123_v51  ;;  %v139_v56 = vld [vmem:[#allocation2 + $0x33] sm:$0xff] }
  0x16   :  { %v1319_v48 = vpack.i.bf16 %v138_v45, %v137_v44  ;;  %545 = vmatpush1.bf16.msra.mxu0 %v1498_v47  ;;  %v140_v57 = vld [vmem:[#allocation2 + $0x3b] sm:$0xff]  ;;  %v109_v58 = vld [vmem:[#allocation2 + $0x49] sm:$0xff]  ;;  %v110_v59 = vld [vmem:[#allocation2 + $0x51] sm:$0xff] }
  0x17   :  { %1300 = vrot.lane.b32.xlu0 %v1299_v39, %s1546_s18  ;;  %546 = vmatprep.subr.bf16.mxu0 %v1543_v4  ;;  %v1334_v60 = vpack.i.bf16 %v140_v57, %v139_v56  ;;  %v125_v61 = vld [vmem:[#allocation2 + $0x4a] sm:$0xff]  ;;  %v1339_v63 = vpack.i.bf16 %v110_v59, %v109_v58  ;;  %v126_v0 = vld [vmem:[#allocation2 + $0x52] sm:$0xff]  ;;  %v111_v3 = vld [vmem:[#allocation2 + $0x61] sm:$0xff] }
  0x18   :  { %1310 = vrot.lane.b32.xlu1 %v1309_v41, %s1544_s14  ;;  %v141_v1 = vld [vmem:[#allocation2 + $0x4b] sm:$0xff]  ;;  %v142_v2 = vld [vmem:[#allocation2 + $0x53] sm:$0xff]  ;;  %v1344_v5 = vpack.i.bf16 %v126_v0, %v125_v61  ;;  %v127_v11 = vld [vmem:[#allocation2 + $0x62] sm:$0xff] }
  0x19   :  { %v1349_v7 = vpack.i.bf16 %v142_v2, %v141_v1  ;;  %v112_v8 = vld [vmem:[#allocation2 + $0x69] sm:$0xff]  ;;  %v113_v19 = vld [vmem:[#allocation2 + $0x79] sm:$0xff]  ;;  %v114_v20 = vld [vmem:[#allocation2 + $0x81] sm:$0xff] }
  0x1a   :  { %547 = vmatpush1.bf16.msra.mxu0 %v1499_v54  ;;  %v151_v9 = vld [vmem:[#allocation2 + $0x4] sm:$0xff]  ;;  %v152_v10 = vld [vmem:[#allocation2 + $0xc] sm:$0xff]  ;;  %v1354_v14 = vpack.i.bf16 %v112_v8, %v111_v3  ;;  %v1369_v23 = vpack.i.bf16 %v114_v20, %v113_v19  ;;  %v129_v24 = vld [vmem:[#allocation2 + $0x7a] sm:$0xff] }
  0x1b   :  { %1315 = vrot.lane.b32.xlu0 %v1314_v46, %s1546_s18  ;;  %548 = vmatprep.subr.bf16.mxu0 %v1543_v4  ;;  %v128_v12 = vld [vmem:[#allocation2 + $0x6a] sm:$0xff]  ;;  %v410_v13 = vpack.c.bf16 %v152_v10, %v151_v9  ;;  %v130_v25 = vld [vmem:[#allocation2 + $0x82] sm:$0xff]  ;;  %v116_v31 = vld [vmem:[#allocation2 + $0x99] sm:$0xff] }
  0x1c   :  { %1320 = vrot.lane.b32.xlu1 %v1319_v48, %s1545_s17  ;;  %v1359_v16 = vpack.i.bf16 %v128_v12, %v127_v11  ;;  %v143_v17 = vld [vmem:[#allocation2 + $0x63] sm:$0xff]  ;;  %v144_v18 = vld [vmem:[#allocation2 + $0x6b] sm:$0xff]  ;;  %v145_v26 = vld [vmem:[#allocation2 + $0x7b] sm:$0xff]  ;;  %v1374_v28 = vpack.i.bf16 %v130_v25, %v129_v24 }
  0x1d   :  { %1169 = vmatprep.mubr.msk.bf16.mxu0 %vm70_vm1, %v410_v13  ;;  %v1364_v21 = vpack.i.bf16 %v144_v18, %v143_v17  ;;  %v146_v27 = vld [vmem:[#allocation2 + $0x83] sm:$0xff]  ;;  %v115_v30 = vld [vmem:[#allocation2 + $0x91] sm:$0xff]  ;;  %v132_v33 = vld [vmem:[#allocation2 + $0x9a] sm:$0xff] }
  0x1e   :  { %549 = vmatpush1.bf16.msra.mxu0 %v1500_v62  ;;  %v1379_v29 = vpack.i.bf16 %v146_v27, %v145_v26  ;;  %v131_v32 = vld [vmem:[#allocation2 + $0x92] sm:$0xff]  ;;  %v1384_v34 = vpack.i.bf16 %v116_v31, %v115_v30  ;;  %v148_v36 = vld [vmem:[#allocation2 + $0x9b] sm:$0xff]  ;;  %v117_v37 = vld [vmem:[#allocation2 + $0xa9] sm:$0xff] }
  0x1f   :  { %1325 = vrot.lane.b32.xlu0 %v1324_v53, %s1544_s14  ;;  %550 = vmatprep.subr.bf16.mxu0 %v1543_v4  ;;  %v1389_v35 = vpack.i.bf16 %v132_v33, %v131_v32  ;;  %v118_v38 = vld [vmem:[#allocation2 + $0xb1] sm:$0xff]  ;;  %v87_v51 = vld [vmem:[#allocation2] sm:$0xff]  ;;  %v88_v52 = vld [vmem:[#allocation2 + $0x8] sm:$0xff] }
  0x20   :  { %1330 = vrot.lane.b32.xlu1 %v1329_v55, %s1546_s18  ;;  %v1399_v40 = vpack.i.bf16 %v118_v38, %v117_v37  ;;  %v133_v41 = vld [vmem:[#allocation2 + $0xaa] sm:$0xff]  ;;  %v134_v42 = vld [vmem:[#allocation2 + $0xb2] sm:$0xff]  ;;  %v153_v56 = vld [vmem:[#allocation2 + $0x1c] sm:$0xff] }
  0x21   :  { %v149_v43 = vld [vmem:[#allocation2 + $0xab] sm:$0xff]  ;;  %v150_v44 = vld [vmem:[#allocation2 + $0xb3] sm:$0xff]  ;;  %v1404_v45 = vpack.i.bf16 %v134_v42, %v133_v41  ;;  %v90_v61 = vld [vmem:[#allocation2 + $0x20] sm:$0xff] }
  0x22   :  { %551 = vmatpush1.bf16.msra.mxu0 %v1501_v6  ;;  %v1409_v46 = vpack.i.bf16 %v150_v44, %v149_v43  ;;  %v154_v57 = vld [vmem:[#allocation2 + $0x24] sm:$0xff]  ;;  %v91_v20 = vld [vmem:[#allocation2 + $0x30] sm:$0xff]  ;;  %v156_v27 = vld [vmem:[#allocation2 + $0x3c] sm:$0xff] }
  0x23   :  { %1335 = vrot.lane.b32.xlu0 %v1334_v60, %s1545_s17  ;;  %564 = vmatprep.subr.bf16.mxu0 %v1543_v4  ;;  %v89_v60 = vld [vmem:[#allocation2 + $0x18] sm:$0xff]  ;;  %v412_v6 = vpack.c.bf16 %v154_v57, %v153_v56  ;;  %v93_v41 = vld [vmem:[#allocation2 + $0x48] sm:$0xff] }
  0x24   :  { %1340 = vrot.lane.b32.xlu1 %v1339_v63, %s1544_s14  ;;  %v155_v26 = vld [vmem:[#allocation2 + $0x34] sm:$0xff] }
  0x26   :  { %565 = vmatpush2.bf16.msra.mxu0 %v1502_v15 }
  0x27   :  { %1345 = vrot.lane.b32.xlu0 %v1344_v5, %s1546_s18  ;;  %566 = vmatprep.subr.bf16.mxu0 %v1543_v4  ;;  %v147_v4 = vld [vmem:[#allocation2 + $0x93] sm:$0xff] }
  0x28   :  { %1350 = vrot.lane.b32.xlu1 %v1349_v7, %s1545_s17  ;;  %v1394_v39 = vpack.i.bf16 %v148_v36, %v147_v4 }
  0x2a   :  { %567 = vmatpush2.bf16.msra.mxu0 %v1503_v22  ;;  %v92_v22 = vld [vmem:[#allocation2 + $0x38] sm:$0xff] }
  0x2b   :  { %1355 = vrot.lane.b32.xlu0 %v1354_v14, %s1544_s14 }
  0x2c   :  { %1360 = vrot.lane.b32.xlu1 %v1359_v16, %s1546_s18 }
  0x2f   :  { %1365 = vrot.lane.b32.xlu0 %v1364_v21, %s1545_s17 }
  0x30   :  { %1370 = vrot.lane.b32.xlu1 %v1369_v23, %s1544_s14 }
  0x33   :  { %1375 = vrot.lane.b32.xlu0 %v1374_v28, %s1546_s18 }
  0x34   :  { %1380 = vrot.lane.b32.xlu1 %v1379_v29, %s1545_s17 }
  0x37   :  { %1385 = vrot.lane.b32.xlu0 %v1384_v34, %s1544_s14 }
  0x38   :  { %1390 = vrot.lane.b32.xlu1 %v1389_v35, %s1546_s18  ;;  %v414_v35 = vpack.c.bf16 %v156_v27, %v155_v26  ;;  %v162_v26 = vld [vmem:[#allocation2 + $0x84] sm:$0xff] }
  0x3b   :  { %1395 = vrot.lane.b32.xlu0 %v1394_v39, %s1545_s17 }
  0x3c   :  { %1400 = vrot.lane.b32.xlu1 %v1399_v40, %s1544_s14 }
  0x3f   :  { %1405 = vrot.lane.b32.xlu0 %v1404_v45, %s1546_s18  ;;  %v94_v45 = vld [vmem:[#allocation2 + $0x50] sm:$0xff] }
  0x40   :  { %1410 = vrot.lane.b32.xlu1 %v1409_v46, %s1545_s17  ;;  %v157_v46 = vld [vmem:[#allocation2 + $0x4c] sm:$0xff] }
  0x85   :  { %v1296_v47 = vpop.permute.xlu0 %1295 }
  0x86   :  { %v1306_v48 = vpop.permute.xlu1 %1305  ;;  %v1298_v49 = vunpack.i.h.bf16 %v1296_v47  ;;  %v1297_v50 = vunpack.i.l.bf16 %v1296_v47  ;;  %v158_v47 = vld [vmem:[#allocation2 + $0x54] sm:$0xff] }
  0x87   :  { %v1308_v53 = vunpack.i.h.bf16 %v1306_v48  ;;  %v1307_v54 = vunpack.i.l.bf16 %v1306_v48 }
  0x88   :  { %v359_v63 = vsel %vm70_vm1, %v87_v51, %v1297_v50  ;;  %v360_v0 = vsel %vm70_vm1, %v88_v52, %v1298_v49 }
  0x89   :  { %v1301_v55 = vpop.permute.xlu0 %1300 }
  0x8a   :  { %v1303_v58 = vunpack.i.h.bf16 %v1301_v55  ;;  %v1302_v59 = vunpack.i.l.bf16 %v1301_v55  ;;  %v1311_v62 = vpop.permute.xlu1 %1310  ;;  %v416_v55 = vpack.c.bf16 %v158_v47, %v157_v46  ;;  %v164_v46 = vld [vmem:[#allocation2 + $0x9c] sm:$0xff] }
  0x8b   :  { %v1313_v1 = vunpack.i.h.bf16 %v1311_v62  ;;  %v1312_v2 = vunpack.i.l.bf16 %v1311_v62 }
  0x8c   :  { %v376_v3 = vsel %vm375_vm2, %v359_v63, %v1302_v59  ;;  %v377_v5 = vsel %vm375_vm2, %v360_v0, %v1303_v58  ;;  %v95_v63 = vld [vmem:[#allocation2 + $0x60] sm:$0xff] }
  0x8d   :  { %v362_v7 = vsel %vm70_vm1, %v90_v61, %v1313_v1  ;;  %v361_v8 = vsel %vm70_vm1, %v89_v60, %v1312_v2  ;;  %v1316_v9 = vpop.permute.xlu0 %1315  ;;  %v393_v10 = vsel %vm392_vm3, %v376_v3, %v1307_v54  ;;  %v394_v11 = vsel %vm392_vm3, %v377_v5, %v1308_v53  ;;  %v96_v2 = vld [vmem:[#allocation2 + $0x68] sm:$0xff] }
  0x8e   :  { %v1318_v12 = vunpack.i.h.bf16 %v1316_v9  ;;  %v1317_v13 = vunpack.i.l.bf16 %v1316_v9  ;;  %v1321_v14 = vpop.permute.xlu1 %1320  ;;  %v409_v15 = vpack.c.bf16 %v394_v11, %v393_v10  ;;  %v159_v3 = vld [vmem:[#allocation2 + $0x64] sm:$0xff]  ;;  %v160_v5 = vld [vmem:[#allocation2 + $0x6c] sm:$0xff] }
  0x8f   :  { %v1323_v16 = vunpack.i.h.bf16 %v1321_v14  ;;  %v1322_v17 = vunpack.i.l.bf16 %v1321_v14 }
  0x90   :  { %v379_v18 = vsel %vm375_vm2, %v362_v7, %v1318_v12  ;;  %v378_v19 = vsel %vm375_vm2, %v361_v8, %v1317_v13  ;;  %569 = vmatmul.mubr.bf16.vlgmr.msra.gmra.mxu0 %v409_v15  ;;  %v418_v13 = vpack.c.bf16 %v160_v5, %v159_v3  ;;  %v166_v3 = vld [vmem:[#allocation2 + $0xb4] sm:$0xff] }
  0x91   :  { %v1326_v21 = vpop.permute.xlu0 %1325  ;;  %1170 = vmatprep.mubr.msk.bf16.mxu0 %vm70_vm1, %v412_v6  ;;  %v395_v28 = vsel %vm392_vm3, %v378_v19, %v1322_v17  ;;  %v396_v29 = vsel %vm392_vm3, %v379_v18, %v1323_v16 }
  0x92   :  { %v1328_v23 = vunpack.i.h.bf16 %v1326_v21  ;;  %v1327_v24 = vunpack.i.l.bf16 %v1326_v21  ;;  %v1331_v25 = vpop.permute.xlu1 %1330  ;;  %v411_v4 = vpack.c.bf16 %v396_v29, %v395_v28  ;;  %v97_v21 = vld [vmem:[#allocation2 + $0x78] sm:$0xff] }
  0x93   :  { %v1333_v30 = vunpack.i.h.bf16 %v1331_v25  ;;  %v1332_v31 = vunpack.i.l.bf16 %v1331_v25  ;;  %v161_v25 = vld [vmem:[#allocation2 + $0x7c] sm:$0xff] }
  0x94   :  { %v364_v32 = vsel %vm70_vm1, %v92_v22, %v1328_v23  ;;  %v363_v33 = vsel %vm70_vm1, %v91_v20, %v1327_v24  ;;  %v98_v24 = vld [vmem:[#allocation2 + $0x80] sm:$0xff] }
  0x95   :  { %v1336_v34 = vpop.permute.xlu0 %1335  ;;  %v380_v39 = vsel %vm375_vm2, %v363_v33, %v1332_v31  ;;  %v381_v40 = vsel %vm375_vm2, %v364_v32, %v1333_v30 }
  0x96   :  { %v1341_v36 = vpop.permute.xlu1 %1340  ;;  %v1338_v37 = vunpack.i.h.bf16 %v1336_v34  ;;  %v1337_v38 = vunpack.i.l.bf16 %v1336_v34  ;;  %v420_v34 = vpack.c.bf16 %v162_v26, %v161_v25 }
  0x97   :  { %v1343_v42 = vunpack.i.h.bf16 %v1341_v36  ;;  %v1342_v43 = vunpack.i.l.bf16 %v1341_v36 }
  0x98   :  { %577 = vmatmul.mubr.bf16.gmra.mxu0 %v411_v4  ;;  %v397_v48 = vsel %vm392_vm3, %v380_v39, %v1337_v38  ;;  %v398_v49 = vsel %vm392_vm3, %v381_v40, %v1338_v37 }
  0x99   :  { %v1346_v44 = vpop.permute.xlu0 %1345  ;;  %1171 = vmatprep.mubr.msk.bf16.mxu0 %vm70_vm1, %v414_v35  ;;  %v366_v53 = vsel %vm70_vm1, %v94_v45, %v1343_v42  ;;  %v365_v54 = vsel %vm70_vm1, %v93_v41, %v1342_v43  ;;  %v413_v56 = vpack.c.bf16 %v398_v49, %v397_v48  ;;  %v99_v41 = vld [vmem:[#allocation2 + $0x90] sm:$0xff] }
  0x9a   :  { %v1348_v50 = vunpack.i.h.bf16 %v1346_v44  ;;  %v1347_v51 = vunpack.i.l.bf16 %v1346_v44  ;;  %v1351_v52 = vpop.permute.xlu1 %1350  ;;  %v100_v44 = vld [vmem:[#allocation2 + $0x98] sm:$0xff] }
  0x9b   :  { %v1353_v58 = vunpack.i.h.bf16 %v1351_v52  ;;  %v1352_v59 = vunpack.i.l.bf16 %v1351_v52  ;;  %v163_v45 = vld [vmem:[#allocation2 + $0x94] sm:$0xff] }
  0x9c   :  { %v383_v60 = vsel %vm375_vm2, %v366_v53, %v1348_v50  ;;  %v382_v61 = vsel %vm375_vm2, %v365_v54, %v1347_v51  ;;  %v422_v54 = vpack.c.bf16 %v164_v46, %v163_v45 }
  0x9d   :  { %v1356_v57 = vpop.permute.xlu0 %1355  ;;  %v399_v6 = vsel %vm392_vm3, %v382_v61, %v1352_v59  ;;  %v400_v7 = vsel %vm392_vm3, %v383_v60, %v1353_v58  ;;  %v101_v61 = vld [vmem:[#allocation2 + $0xa8] sm:$0xff] }
  0x9e   :  { %v1361_v62 = vpop.permute.xlu1 %1360  ;;  %v1358_v0 = vunpack.i.h.bf16 %v1356_v57  ;;  %v1357_v1 = vunpack.i.l.bf16 %v1356_v57  ;;  %v415_v14 = vpack.c.bf16 %v400_v7, %v399_v6 }
  0x9f   :  { %v1363_v8 = vunpack.i.h.bf16 %v1361_v62  ;;  %v1362_v9 = vunpack.i.l.bf16 %v1361_v62 }
  0xa0   :  { %585 = vmatmul.mubr.bf16.gmra.mxu0 %v413_v56  ;;  %v368_v11 = vsel %vm70_vm1, %v96_v2, %v1358_v0  ;;  %v367_v12 = vsel %vm70_vm1, %v95_v63, %v1357_v1  ;;  %v102_v1 = vld [vmem:[#allocation2 + $0xb0] sm:$0xff] }
  0xa1   :  { %1172 = vmatprep.mubr.msk.bf16.mxu0 %vm70_vm1, %v416_v55  ;;  %v1366_v10 = vpop.permute.xlu0 %1365  ;;  %v384_v18 = vsel %vm375_vm2, %v367_v12, %v1362_v9  ;;  %v385_v19 = vsel %vm375_vm2, %v368_v11, %v1363_v8  ;;  %v165_v2 = vld [vmem:[#allocation2 + $0xac] sm:$0xff] }
  0xa2   :  { %v1371_v15 = vpop.permute.xlu1 %1370  ;;  %v1368_v16 = vunpack.i.h.bf16 %v1366_v10  ;;  %v1367_v17 = vunpack.i.l.bf16 %v1366_v10  ;;  %v424_v12 = vpack.c.bf16 %v166_v3, %v165_v2  ;;  %v1507_v2 = vld [vmem:[%s1983_s3 + $0x10] sm:$0xff]  }
  0xa3   :  { %v1373_v22 = vunpack.i.h.bf16 %v1371_v15  ;;  %v1372_v23 = vunpack.i.l.bf16 %v1371_v15 }
  0xa4   :  { %v401_v27 = vsel %vm392_vm3, %v384_v18, %v1367_v17  ;;  %v402_v28 = vsel %vm392_vm3, %v385_v19, %v1368_v16 }
  0xa5   :  { %v1376_v20 = vpop.permute.xlu0 %1375  ;;  %v370_v32 = vsel %vm70_vm1, %v98_v24, %v1373_v22  ;;  %v369_v33 = vsel %vm70_vm1, %v97_v21, %v1372_v23  ;;  %v417_v35 = vpack.c.bf16 %v402_v28, %v401_v27  ;;  %v1504_v21 = vld [vmem:[%s1983_s3 + $0x28] sm:$0xff]   ;;  %v1505_v22 = vld [vmem:[%s1983_s3 + $0x20] sm:$0xff]  }
  0xa6   :  { %v1378_v29 = vunpack.i.h.bf16 %v1376_v20  ;;  %v1377_v30 = vunpack.i.l.bf16 %v1376_v20  ;;  %v1381_v31 = vpop.permute.xlu1 %1380  ;;  %1261 = vmatprep.subr.bf16.mxu1 %v1504_v21  ;;  %v1762_v23 = vld [vmem:[%s1984_s2] ss:$0 sm:$0xff] }
  0xa7   :  { %v1383_v36 = vunpack.i.h.bf16 %v1381_v31  ;;  %v1382_v37 = vunpack.i.l.bf16 %v1381_v31  ;;  %1262 = vmatpush3.bf16.msra.mxu1 %v1504_v21 }
  0xa8   :  { %593 = vmatmul.mubr.bf16.gmra.mxu0 %v415_v14  ;;  %v387_v38 = vsel %vm375_vm2, %v370_v32, %v1378_v29  ;;  %v386_v39 = vsel %vm375_vm2, %v369_v33, %v1377_v30  ;;  %1263 = vmatprep.subr.bf16.mxu1 %v1505_v22 }
  0xa9   :  { %1173 = vmatprep.mubr.msk.bf16.mxu0 %vm70_vm1, %v418_v13  ;;  %v1386_v4 = vpop.permute.xlu0 %1385  ;;  %v403_v47 = vsel %vm392_vm3, %v386_v39, %v1382_v37  ;;  %v404_v48 = vsel %vm392_vm3, %v387_v38, %v1383_v36 }
  0xaa   :  { %v1391_v40 = vpop.permute.xlu1 %1390  ;;  %v1388_v42 = vunpack.i.h.bf16 %v1386_v4  ;;  %v1387_v43 = vunpack.i.l.bf16 %v1386_v4  ;;  %v419_v55 = vpack.c.bf16 %v404_v48, %v403_v47 }
  0xab   :  { %v1393_v49 = vunpack.i.h.bf16 %v1391_v40  ;;  %v1392_v50 = vunpack.i.l.bf16 %v1391_v40  ;;  %1264 = vmatpush3.bf16.msra.mxu1 %v1505_v22 }
  0xac   :  { %v372_v52 = vsel %vm70_vm1, %v100_v44, %v1388_v42  ;;  %v371_v53 = vsel %vm70_vm1, %v99_v41, %v1387_v43 }
  0xad   :  { %v1396_v51 = vpop.permute.xlu0 %1395  ;;  %v388_v59 = vsel %vm375_vm2, %v371_v53, %v1392_v50  ;;  %v389_v60 = vsel %vm375_vm2, %v372_v52, %v1393_v49 }
  0xae   :  { %v1401_v56 = vpop.permute.xlu1 %1400  ;;  %v1398_v57 = vunpack.i.h.bf16 %v1396_v51  ;;  %v1397_v58 = vunpack.i.l.bf16 %v1396_v51 }
  0xaf   :  { %v1403_v62 = vunpack.i.h.bf16 %v1401_v56  ;;  %v1402_v63 = vunpack.i.l.bf16 %v1401_v56 }
  0xb0   :  { %601 = vmatmul.mubr.bf16.gmra.mxu0 %v417_v35  ;;  %v405_v5 = vsel %vm392_vm3, %v388_v59, %v1397_v58  ;;  %v406_v6 = vsel %vm392_vm3, %v389_v60, %v1398_v57  ;;  %v1506_v57 = vld [vmem:[%s1983_s3 + $0x18] sm:$0xff]  }
  0xb1   :  { %1174 = vmatprep.mubr.msk.bf16.mxu0 %vm70_vm1, %v420_v34  ;;  %v1406_v0 = vpop.permute.xlu0 %1405  ;;  %v374_v10 = vsel %vm70_vm1, %v102_v1, %v1403_v62  ;;  %v373_v11 = vsel %vm70_vm1, %v101_v61, %v1402_v63  ;;  %v421_v13 = vpack.c.bf16 %v406_v6, %v405_v5  ;;  %1265 = vmatprep.subr.bf16.mxu1 %v1506_v57 }
  0xb2   :  { %v1408_v7 = vunpack.i.h.bf16 %v1406_v0  ;;  %v1407_v8 = vunpack.i.l.bf16 %v1406_v0  ;;  %v1411_v9 = vpop.permute.xlu1 %1410  ;;  %1266 = vmatpush3.bf16.msra.mxu1 %v1506_v57 }
  0xb3   :  { %v1413_v14 = vunpack.i.h.bf16 %v1411_v9  ;;  %v1412_v15 = vunpack.i.l.bf16 %v1411_v9  ;;  %1267 = vmatprep.subr.bf16.mxu1 %v1507_v2 }
  0xb4   :  { %v391_v16 = vsel %vm375_vm2, %v374_v10, %v1408_v7  ;;  %v390_v17 = vsel %vm375_vm2, %v373_v11, %v1407_v8 }
  0xb5   :  { %v407_v18 = vsel %vm392_vm3, %v390_v17, %v1412_v15  ;;  %v408_v19 = vsel %vm392_vm3, %v391_v16, %v1413_v14  ;;  %v1508_v15 = vld [vmem:[%s1983_s3 + $0x8] sm:$0xff]  }
  0xb6   :  { %v423_v20 = vpack.c.bf16 %v408_v19, %v407_v18  ;;  %1268 = vmatpush3.bf16.msra.mxu1 %v1507_v2 }
  0xb7   :  { %1269 = vmatprep.subr.bf16.mxu1 %v1508_v15 }
  0xb8   :  { %609 = vmatmul.mubr.bf16.gmra.mxu0 %v419_v55 }
  0xb9   :  { %1175 = vmatprep.mubr.msk.bf16.mxu0 %vm70_vm1, %v422_v54 }
  0xba   :  { %1270 = vmatpush3.bf16.msra.mxu1 %v1508_v15 }
  0xc0   :  { %617 = vmatmul.mubr.bf16.gmra.mxu0 %v421_v13 }
  0xc1   :  { %1176 = vmatprep.mubr.msk.bf16.mxu0 %vm70_vm1, %v424_v12 }
  0xc8   :  { %625 = vmatmul.mubr.bf16.gmra.mxu0 %v423_v20 }
 0x150   :  { %v570_v24 = vpop.f32.mrf.mxu0 }
 0x151   :  { %v571_v25 = vadd.f32 %v1762_v23, %v570_v24 }
 0x152   :  { %v572_v26 = vpop.f32.mrf.mxu0 }
 0x153   :  { %v649_v27 = vmin.f32 %v571_v25, 0.0  ;;  %vm633_vm4 = vcmp.gt.f32.partialorder %v571_v25, 0.0 }
 0x154   :  { %v573_v28 = vpop.f32.mrf.mxu0 }
 0x155   :  { %v665_v29 = vmul.f32 1.442695, %v649_v27  ;;  %v574_v30 = vadd.f32 %v1762_v23, %v573_v28 }
 0x156   :  { %v575_v31 = vpop.f32.mrf.mxu0 }
 0x157   :  { %1510 = vpow2.f32 %v665_v29  ;;  %v650_v32 = vmin.f32 %v574_v30, 0.0  ;;  %vm634_vm5 = vcmp.gt.f32.partialorder %v574_v30, 0.0 }
 0x158   :  { %v578_v33 = vpop.f32.mrf.mxu0 }
 0x159   :  { %v667_v34 = vmul.f32 1.442695, %v650_v32  ;;  %v579_v35 = vadd.f32 %v1762_v23, %v578_v33 }
 0x15a   :  { %v580_v4 = vpop.f32.mrf.mxu0 }
 0x15b   :  { %1512 = vpow2.f32 %v667_v34  ;;  %v651_v36 = vmin.f32 %v579_v35, 0.0  ;;  %vm635_vm6 = vcmp.gt.f32.partialorder %v579_v35, 0.0 }
 0x15c   :  { %v581_v37 = vpop.f32.mrf.mxu0 }
 0x15d   :  { %v669_v38 = vmul.f32 1.442695, %v651_v36  ;;  %v582_v39 = vadd.f32 %v1762_v23, %v581_v37 }
 0x15e   :  { %v583_v40 = vpop.f32.mrf.mxu0 }
 0x15f   :  { %1514 = vpow2.f32 %v669_v38  ;;  %v652_v41 = vmin.f32 %v582_v39, 0.0  ;;  %vm636_vm7 = vcmp.gt.f32.partialorder %v582_v39, 0.0 }
 0x160   :  { %v586_v42 = vpop.f32.mrf.mxu0 }
 0x161   :  { %v671_v43 = vmul.f32 1.442695, %v652_v41  ;;  %v1769_v44 = vadd.f32 %v1762_v23, %v586_v42 }
 0x162   :  { %v588_v45 = vpop.f32.mrf.mxu0 }
 0x163   :  { %1516 = vpow2.f32 %v671_v43  ;;  %v653_v46 = vmin.f32 %v1769_v44, 0.0  ;;  %vm637_vm8 = vcmp.gt.f32.partialorder %v1769_v44, 0.0 }
 0x164   :  { %v1511_v47 = vpop.eup %1510  ;;  %v589_v48 = vpop.f32.mrf.mxu0 }
 0x165   :  { %v1177_v49 = vadd.f32 -1.0, %v1511_v47  ;;  %v673_v50 = vmul.f32 1.442695, %v653_v46  ;;  %v1773_v51 = vadd.f32 %v1762_v23, %v589_v48 }
 0x166   :  { %v591_v52 = vpop.f32.mrf.mxu0 }
 0x167   :  { %v713_v53 = vsel %vm633_vm4, %v571_v25, %v1177_v49  ;;  %1518 = vpow2.f32 %v673_v50  ;;  %v654_v54 = vmin.f32 %v1773_v51, 0.0  ;;  %vm638_vm9 = vcmp.gt.f32.partialorder %v1773_v51, 0.0 }
 0x168   :  { %v1513_v55 = vpop.eup %1512  ;;  %729 = vst.msk [vmem:[#allocation2 + $0x2] sm:$0xff] %vm70_vm1, %v713_v53  ;;  %v594_v56 = vpop.f32.mrf.mxu0 }
 0x169   :  { %v1178_v58 = vadd.f32 -1.0, %v1513_v55  ;;  %v675_v59 = vmul.f32 1.442695, %v654_v54  ;;  %v1781_v60 = vadd.f32 %v1762_v23, %v594_v56 }
 0x16a   :  { %v596_v61 = vpop.f32.mrf.mxu0 }
 0x16b   :  { %v714_v62 = vsel %vm634_vm5, %v574_v30, %v1178_v58  ;;  %1520 = vpow2.f32 %v675_v59  ;;  %v655_v63 = vmin.f32 %v1781_v60, 0.0  ;;  %v1509_v30 = vld [vmem:[%s1983_s3] sm:$0xff]   ;;  %vm639_vm10 = vcmp.gt.f32.partialorder %v1781_v60, 0.0 }
 0x16c   :  { %v1515_v0 = vpop.eup %1514  ;;  %730 = vst.msk [vmem:[#allocation2 + $0xa] sm:$0xff] %vm70_vm1, %v714_v62  ;;  %v597_v1 = vpop.f32.mrf.mxu0  ;;  %1271 = vmatprep.subr.bf16.mxu1 %v1509_v30 }
 0x16d   :  { %v1179_v3 = vadd.f32 -1.0, %v1515_v0  ;;  %v677_v5 = vmul.f32 1.442695, %v655_v63  ;;  %v1789_v6 = vadd.f32 %v1762_v23, %v597_v1  ;;  %1272 = vmatpush3.bf16.msra.mxu1 %v1509_v30 }
 0x16e   :  { %v599_v7 = vpop.f32.mrf.mxu0 }
 0x16f   :  { %v715_v8 = vsel %vm635_vm6, %v579_v35, %v1179_v3  ;;  %1522 = vpow2.f32 %v677_v5  ;;  %v656_v9 = vmin.f32 %v1789_v6, 0.0  ;;  %v761_v19 = vld [vmem:[#allocation2 + $0x2] sm:$0xff]  ;;  %vm640_vm11 = vcmp.gt.f32.partialorder %v1789_v6, 0.0 }
 0x170   :  { %v1517_v10 = vpop.eup %1516  ;;  %731 = vst.msk [vmem:[#allocation2 + $0x1a] sm:$0xff] %vm70_vm1, %v715_v8  ;;  %v602_v11 = vpop.f32.mrf.mxu0 }
 0x171   :  { %v1180_v12 = vadd.f32 -1.0, %v1517_v10  ;;  %v679_v13 = vmul.f32 1.442695, %v656_v9  ;;  %v1794_v14 = vadd.f32 %v1762_v23, %v602_v11 }
 0x172   :  { %v604_v16 = vpop.f32.mrf.mxu0 }
 0x173   :  { %v716_v17 = vsel %vm636_vm7, %v582_v39, %v1180_v12  ;;  %1524 = vpow2.f32 %v679_v13  ;;  %v657_v18 = vmin.f32 %v1794_v14, 0.0  ;;  %v762_v20 = vld [vmem:[#allocation2 + $0xa] sm:$0xff]  ;;  %vm641_vm12 = vcmp.gt.f32.partialorder %v1794_v14, 0.0 }
 0x174   :  { %v1519_v21 = vpop.eup %1518  ;;  %732 = vst.msk [vmem:[#allocation2 + $0x22] sm:$0xff] %vm70_vm1, %v716_v17  ;;  %v605_v22 = vpop.f32.mrf.mxu0  ;;  %v1414_v24 = vpack.i.bf16 %v762_v20, %v761_v19  ;;  %v777_v28 = vld [vmem:[#allocation2 + $0x3] sm:$0xff]  ;;  %v778_v29 = vld [vmem:[#allocation2 + $0xb] sm:$0xff]  ;;  %vm1137_vm7 = vcmask 15360  }
 0x175   :  { %v1181_v25 = vadd.f32 -1.0, %v1519_v21  ;;  %v681_v26 = vmul.f32 1.442695, %v657_v18  ;;  %v1802_v27 = vadd.f32 %v1762_v23, %v605_v22  ;;  %v1419_v4 = vpack.i.bf16 %v778_v29, %v777_v28 }
 0x176   :  { %v607_v31 = vpop.f32.mrf.mxu0  ;;  %1415 = vrot.lane.b32.xlu0 %v1414_v24, %s1544_s14 }
 0x177   :  { %v717_v32 = vsel %vm637_vm8, %v1769_v44, %v1181_v25  ;;  %1526 = vpow2.f32 %v681_v26  ;;  %v658_v33 = vmin.f32 %v1802_v27, 0.0  ;;  %v763_v42 = vld [vmem:[#allocation2 + $0x1a] sm:$0xff]  ;;  %vm642_vm13 = vcmp.gt.f32.partialorder %v1802_v27, 0.0 }
 0x178   :  { %v1521_v34 = vpop.eup %1520  ;;  %733 = vst.msk [vmem:[#allocation2 + $0x32] sm:$0xff] %vm70_vm1, %v717_v32  ;;  %v610_v35 = vpop.f32.mrf.mxu0 }
 0x179   :  { %v1182_v36 = vadd.f32 -1.0, %v1521_v34  ;;  %v683_v37 = vmul.f32 1.442695, %v658_v33  ;;  %v1813_v38 = vadd.f32 %v1762_v23, %v610_v35 }
 0x17a   :  { %v612_v39 = vpop.f32.mrf.mxu0  ;;  %1420 = vrot.lane.b32.xlu0 %v1419_v4, %s1546_s18 }
 0x17b   :  { %v718_v40 = vsel %vm638_vm9, %v1773_v51, %v1182_v36  ;;  %1528 = vpow2.f32 %v683_v37  ;;  %v659_v41 = vmin.f32 %v1813_v38, 0.0  ;;  %v764_v43 = vld [vmem:[#allocation2 + $0x22] sm:$0xff]  ;;  %vm643_vm14 = vcmp.gt.f32.partialorder %v1813_v38, 0.0 }
 0x17c   :  { %v1523_v44 = vpop.eup %1522  ;;  %734 = vst.msk [vmem:[#allocation2 + $0x3a] sm:$0xff] %vm70_vm1, %v718_v40  ;;  %v613_v45 = vpop.f32.mrf.mxu0  ;;  %v1424_v46 = vpack.i.bf16 %v764_v43, %v763_v42  ;;  %v779_v50 = vld [vmem:[#allocation2 + $0x1b] sm:$0xff]  ;;  %v780_v52 = vld [vmem:[#allocation2 + $0x23] sm:$0xff] }
 0x17d   :  { %v1183_v47 = vadd.f32 -1.0, %v1523_v44  ;;  %v685_v48 = vmul.f32 1.442695, %v659_v41  ;;  %v1821_v49 = vadd.f32 %v1762_v23, %v613_v45  ;;  %v1429_v57 = vpack.i.bf16 %v780_v52, %v779_v50 }
 0x17e   :  { %v615_v51 = vpop.f32.mrf.mxu0  ;;  %1425 = vrot.lane.b32.xlu1 %v1424_v46, %s1544_s14 }
 0x17f   :  { %v719_v53 = vsel %vm639_vm10, %v1781_v60, %v1183_v47  ;;  %1530 = vpow2.f32 %v685_v48  ;;  %v660_v54 = vmin.f32 %v1821_v49, 0.0  ;;  %v765_v0 = vld [vmem:[#allocation2 + $0x32] sm:$0xff]  ;;  %vm644_vm15 = vcmp.gt.f32.partialorder %v1821_v49, 0.0 }
 0x180   :  { %v1525_v55 = vpop.eup %1524  ;;  %735 = vst.msk [vmem:[#allocation2 + $0x4a] sm:$0xff] %vm70_vm1, %v719_v53  ;;  %v618_v56 = vpop.f32.mrf.mxu0 }
 0x181   :  { %v1184_v58 = vadd.f32 -1.0, %v1525_v55  ;;  %v687_v59 = vmul.f32 1.442695, %v660_v54  ;;  %v1829_v61 = vadd.f32 %v1762_v23, %v618_v56 }
 0x182   :  { %v620_v62 = vpop.f32.mrf.mxu0  ;;  %1430 = vrot.lane.b32.xlu1 %v1429_v57, %s1546_s18 }
 0x183   :  { %v720_v60 = vsel %vm640_vm11, %v1789_v6, %v1184_v58  ;;  %1532 = vpow2.f32 %v687_v59  ;;  %v661_v63 = vmin.f32 %v1829_v61, 0.0  ;;  %v766_v1 = vld [vmem:[#allocation2 + $0x3a] sm:$0xff]  ;;  %vm645_vm0 = vcmp.gt.f32.partialorder %v1829_v61, 0.0 }
 0x184   :  { %v1527_v2 = vpop.eup %1526  ;;  %736 = vst.msk [vmem:[#allocation2 + $0x52] sm:$0xff] %vm70_vm1, %v720_v60  ;;  %v621_v3 = vpop.f32.mrf.mxu0  ;;  %v1434_v5 = vpack.i.bf16 %v766_v1, %v765_v0  ;;  %v781_v10 = vld [vmem:[#allocation2 + $0x33] sm:$0xff]  ;;  %v782_v11 = vld [vmem:[#allocation2 + $0x3b] sm:$0xff] }
 0x185   :  { %v1185_v7 = vadd.f32 -1.0, %v1527_v2  ;;  %v689_v8 = vmul.f32 1.442695, %v661_v63  ;;  %v1837_v9 = vadd.f32 %v1762_v23, %v621_v3  ;;  %v1439_v17 = vpack.i.bf16 %v782_v11, %v781_v10 }
 0x186   :  { %v623_v6 = vpop.f32.mrf.mxu0  ;;  %1435 = vrot.lane.b32.xlu0 %v1434_v5, %s1544_s14 }
 0x187   :  { %v721_v12 = vsel %vm641_vm12, %v1794_v14, %v1185_v7  ;;  %1534 = vpow2.f32 %v689_v8  ;;  %v662_v13 = vmin.f32 %v1837_v9, 0.0  ;;  %v767_v24 = vld [vmem:[#allocation2 + $0x4a] sm:$0xff]  ;;  %vm646_vm4 = vcmp.gt.f32.partialorder %v1837_v9, 0.0 }
 0x188   :  { %v1529_v15 = vpop.eup %1528  ;;  %737 = vst.msk [vmem:[#allocation2 + $0x62] sm:$0xff] %vm70_vm1, %v721_v12  ;;  %v626_v16 = vpop.f32.mrf.mxu0 }
 0x189   :  { %v1186_v18 = vadd.f32 -1.0, %v1529_v15  ;;  %v691_v19 = vmul.f32 1.442695, %v662_v13  ;;  %v627_v20 = vadd.f32 %v1762_v23, %v626_v16 }
 0x18a   :  { %v628_v21 = vpop.f32.mrf.mxu0  ;;  %1440 = vrot.lane.b32.xlu0 %v1439_v17, %s1546_s18 }
 0x18b   :  { %v722_v22 = vsel %vm642_vm13, %v1802_v27, %v1186_v18  ;;  %1536 = vpow2.f32 %v691_v19  ;;  %v663_v14 = vmin.f32 %v627_v20, 0.0  ;;  %v768_v25 = vld [vmem:[#allocation2 + $0x52] sm:$0xff]  ;;  %vm647_vm5 = vcmp.gt.f32.partialorder %v627_v20, 0.0  ;;  %v746_v21 = vld [vmem:[#allocation2 + $0x9] sm:$0xff] }
 0x18c   :  { %v1531_v26 = vpop.eup %1530  ;;  %738 = vst.msk [vmem:[#allocation2 + $0x6a] sm:$0xff] %vm70_vm1, %v722_v22  ;;  %v629_v28 = vpop.f32.mrf.mxu0  ;;  %v1444_v29 = vpack.i.bf16 %v768_v25, %v767_v24  ;;  %v783_v33 = vld [vmem:[#allocation2 + $0x4b] sm:$0xff]  ;;  %v784_v34 = vld [vmem:[#allocation2 + $0x53] sm:$0xff] }
 0x18d   :  { %v1187_v30 = vadd.f32 -1.0, %v1531_v26  ;;  %v693_v31 = vmul.f32 1.442695, %v663_v14  ;;  %v630_v32 = vadd.f32 %v1762_v23, %v629_v28  ;;  %v1449_v37 = vpack.i.bf16 %v784_v34, %v783_v33  ;;  %v748_v33 = vld [vmem:[#allocation2 + $0x21] sm:$0xff] }
 0x18e   :  { %v631_v35 = vpop.f32.mrf.mxu0  ;;  %1445 = vrot.lane.b32.xlu1 %v1444_v29, %s1544_s14 }
 0x18f   :  { %v723_v27 = vsel %vm643_vm14, %v1813_v38, %v1187_v30  ;;  %1538 = vpow2.f32 %v693_v31  ;;  %v664_v4 = vmin.f32 %v630_v32, 0.0  ;;  %v769_v41 = vld [vmem:[#allocation2 + $0x62] sm:$0xff]  ;;  %vm648_vm6 = vcmp.gt.f32.partialorder %v630_v32, 0.0 }
 0x190   :  { %v1533_v36 = vpop.eup %1532  ;;  %739 = vst.msk [vmem:[#allocation2 + $0x7a] sm:$0xff] %vm70_vm1, %v723_v27 }
 0x191   :  { %v1188_v39 = vadd.f32 -1.0, %v1533_v36  ;;  %v695_v40 = vmul.f32 1.442695, %v664_v4 }
 0x192   :  { %1450 = vrot.lane.b32.xlu1 %v1449_v37, %s1546_s18 }
 0x193   :  { %v724_v23 = vsel %vm644_vm15, %v1821_v49, %v1188_v39  ;;  %1540 = vpow2.f32 %v695_v40  ;;  %v770_v42 = vld [vmem:[#allocation2 + $0x6a] sm:$0xff] }
 0x194   :  { %v1535_v43 = vpop.eup %1534  ;;  %740 = vst.msk [vmem:[#allocation2 + $0x82] sm:$0xff] %vm70_vm1, %v724_v23  ;;  %v1454_v38 = vpack.i.bf16 %v770_v42, %v769_v41  ;;  %v785_v45 = vld [vmem:[#allocation2 + $0x63] sm:$0xff]  ;;  %v786_v46 = vld [vmem:[#allocation2 + $0x6b] sm:$0xff] }
 0x195   :  { %v1189_v44 = vadd.f32 -1.0, %v1535_v43  ;;  %v1459_v49 = vpack.i.bf16 %v786_v46, %v785_v45  ;;  %v749_v43 = vld [vmem:[#allocation2 + $0x31] sm:$0xff] }
 0x196   :  { %1455 = vrot.lane.b32.xlu0 %v1454_v38, %s1544_s14  ;;  %v750_v38 = vld [vmem:[#allocation2 + $0x39] sm:$0xff] }
 0x197   :  { %v725_v47 = vsel %vm645_vm0, %v1829_v61, %v1189_v44  ;;  %v771_v51 = vld [vmem:[#allocation2 + $0x7a] sm:$0xff] }
 0x198   :  { %v1537_v48 = vpop.eup %1536  ;;  %741 = vst.msk [vmem:[#allocation2 + $0x92] sm:$0xff] %vm70_vm1, %v725_v47 }
 0x199   :  { %v1190_v50 = vadd.f32 -1.0, %v1537_v48 }
 0x19a   :  { %1460 = vrot.lane.b32.xlu0 %v1459_v49, %s1546_s18 }
 0x19b   :  { %v726_v52 = vsel %vm646_vm4, %v1837_v9, %v1190_v50  ;;  %v772_v53 = vld [vmem:[#allocation2 + $0x82] sm:$0xff] }
 0x19c   :  { %v1539_v54 = vpop.eup %1538  ;;  %742 = vst.msk [vmem:[#allocation2 + $0x9a] sm:$0xff] %vm70_vm1, %v726_v52  ;;  %v1464_v55 = vpack.i.bf16 %v772_v53, %v771_v51  ;;  %v787_v57 = vld [vmem:[#allocation2 + $0x7b] sm:$0xff]  ;;  %v788_v58 = vld [vmem:[#allocation2 + $0x83] sm:$0xff] }
 0x19d   :  { %v1191_v56 = vadd.f32 -1.0, %v1539_v54  ;;  %v1469_v62 = vpack.i.bf16 %v788_v58, %v787_v57 }
 0x19e   :  { %1465 = vrot.lane.b32.xlu1 %v1464_v55, %s1544_s14  ;;  %v751_v55 = vld [vmem:[#allocation2 + $0x49] sm:$0xff] }
 0x19f   :  { %v727_v59 = vsel %vm647_vm5, %v627_v20, %v1191_v56  ;;  %v773_v0 = vld [vmem:[#allocation2 + $0x92] sm:$0xff]  ;;  %v745_v20 = vld [vmem:[#allocation2 + $0x1] sm:$0xff] }
 0x1a0   :  { %v1541_v61 = vpop.eup %1540  ;;  %743 = vst.msk [vmem:[#allocation2 + $0xaa] sm:$0xff] %vm70_vm1, %v727_v59  ;;  %v752_v56 = vld [vmem:[#allocation2 + $0x51] sm:$0xff] }
 0x1a1   :  { %v1192_v60 = vadd.f32 -1.0, %v1541_v61 }
 0x1a2   :  { %1470 = vrot.lane.b32.xlu1 %v1469_v62, %s1546_s18 }
 0x1a3   :  { %v728_v63 = vsel %vm648_vm6, %v630_v32, %v1192_v60  ;;  %v774_v1 = vld [vmem:[#allocation2 + $0x9a] sm:$0xff] }
 0x1a4   :  { %744 = vst.msk [vmem:[#allocation2 + $0xb2] sm:$0xff] %vm70_vm1, %v728_v63  ;;  %v1474_v2 = vpack.i.bf16 %v774_v1, %v773_v0  ;;  %v789_v3 = vld [vmem:[#allocation2 + $0x93] sm:$0xff]  ;;  %v790_v5 = vld [vmem:[#allocation2 + $0x9b] sm:$0xff] }
 0x1a5   :  { %v1484_v7 = vpack.i.bf16 %v790_v5, %v789_v3  ;;  %v747_v32 = vld [vmem:[#allocation2 + $0x19] sm:$0xff]  ;;  %v753_v5 = vld [vmem:[#allocation2 + $0x61] sm:$0xff] }
 0x1a6   :  { %1475 = vrot.lane.b32.xlu0 %v1474_v2, %s1544_s14 }
 0x1a7   :  { %v775_v8 = vld [vmem:[#allocation2 + $0xaa] sm:$0xff] }
 0x1aa   :  { %1485 = vrot.lane.b32.xlu0 %v1484_v7, %s1546_s18  ;;  %v754_v7 = vld [vmem:[#allocation2 + $0x69] sm:$0xff] }
 0x1ab   :  { %v776_v9 = vld [vmem:[#allocation2 + $0xb2] sm:$0xff] }
 0x1ac   :  { %v1479_v10 = vpack.i.bf16 %v776_v9, %v775_v8  ;;  %v791_v11 = vld [vmem:[#allocation2 + $0xab] sm:$0xff]  ;;  %v792_v6 = vld [vmem:[#allocation2 + $0xb3] sm:$0xff] }
 0x1ad   :  { %v1489_v12 = vpack.i.bf16 %v792_v6, %v791_v11 }
 0x1ae   :  { %1480 = vrot.lane.b32.xlu1 %v1479_v10, %s1544_s14 }
 0x1b2   :  { %1490 = vrot.lane.b32.xlu1 %v1489_v12, %s1546_s18 }
 0x1e8   :  { %v1416_v13 = vpop.permute.xlu0 %1415 }
 0x1e9   :  { %v1418_v15 = vunpack.i.h.bf16 %v1416_v13  ;;  %v1417_v16 = vunpack.i.l.bf16 %v1416_v13 }
 0x1eb   :  { %v921_v22 = vsel %vm70_vm1, %v745_v20, %v1417_v16  ;;  %v922_v14 = vsel %vm70_vm1, %v746_v21, %v1418_v15  ;;  %v756_v20 = vld [vmem:[#allocation2 + $0x81] sm:$0xff] }
 0x1ec   :  { %v1421_v17 = vpop.permute.xlu0 %1420 }
 0x1ed   :  { %v1423_v18 = vunpack.i.h.bf16 %v1421_v17  ;;  %v1422_v19 = vunpack.i.l.bf16 %v1421_v17 }
 0x1ef   :  { %v937_v24 = vsel %vm375_vm2, %v921_v22, %v1422_v19  ;;  %v938_v25 = vsel %vm375_vm2, %v922_v14, %v1423_v18  ;;  %v755_v19 = vld [vmem:[#allocation2 + $0x79] sm:$0xff] }
 0x1f0   :  { %v1426_v26 = vpop.permute.xlu1 %1425  ;;  %v953_v28 = vpack.c.bf16 %v938_v25, %v937_v24 }
 0x1f1   :  { %v1428_v29 = vunpack.i.h.bf16 %v1426_v26  ;;  %v1427_v30 = vunpack.i.l.bf16 %v1426_v26 }
 0x1f2   :  { %1273 = vmatprep.mubr.msk.bf16.mxu1 %vm392_vm3, %v953_v28 }
 0x1f3   :  { %v923_v27 = vsel %vm70_vm1, %v747_v32, %v1427_v30  ;;  %v924_v4 = vsel %vm70_vm1, %v748_v33, %v1428_v29  ;;  %v757_v33 = vld [vmem:[#allocation2 + $0x91] sm:$0xff] }
 0x1f4   :  { %v1431_v31 = vpop.permute.xlu1 %1430 }
 0x1f5   :  { %v1433_v34 = vunpack.i.h.bf16 %v1431_v31  ;;  %v1432_v35 = vunpack.i.l.bf16 %v1431_v31 }
 0x1f7   :  { %v939_v36 = vsel %vm375_vm2, %v923_v27, %v1432_v35  ;;  %v940_v37 = vsel %vm375_vm2, %v924_v4, %v1433_v34  ;;  %v758_v34 = vld [vmem:[#allocation2 + $0x99] sm:$0xff] }
 0x1f8   :  { %v954_v39 = vpack.c.bf16 %v940_v37, %v939_v36  ;;  %v1436_v40 = vpop.permute.xlu0 %1435 }
 0x1f9   :  { %v1438_v23 = vunpack.i.h.bf16 %v1436_v40  ;;  %v1437_v41 = vunpack.i.l.bf16 %v1436_v40 }
 0x1fa   :  { %1274 = vmatmul.mubr.msk.bf16.vlgmr.msra.gmra.mxu1 %vm392_vm3, %v954_v39 }
 0x1fb   :  { %v926_v46 = vsel %vm70_vm1, %v750_v38, %v1438_v23  ;;  %v925_v47 = vsel %vm70_vm1, %v749_v43, %v1437_v41  ;;  %v759_v38 = vld [vmem:[#allocation2 + $0xa9] sm:$0xff] }
 0x1fc   :  { %v1441_v42 = vpop.permute.xlu0 %1440 }
 0x1fd   :  { %v1443_v44 = vunpack.i.h.bf16 %v1441_v42  ;;  %v1442_v45 = vunpack.i.l.bf16 %v1441_v42 }
 0x1ff   :  { %v941_v48 = vsel %vm375_vm2, %v925_v47, %v1442_v45  ;;  %v942_v49 = vsel %vm375_vm2, %v926_v46, %v1443_v44  ;;  %v760_v44 = vld [vmem:[#allocation2 + $0xb1] sm:$0xff] }
 0x200   :  { %v955_v50 = vpack.c.bf16 %v942_v49, %v941_v48  ;;  %v1446_v52 = vpop.permute.xlu1 %1445 }
 0x201   :  { %v1448_v51 = vunpack.i.h.bf16 %v1446_v52  ;;  %v1447_v53 = vunpack.i.l.bf16 %v1446_v52 }
 0x202   :  { %1277 = vmatprep.mubr.msk.bf16.mxu1 %vm392_vm3, %v955_v50 }
 0x203   :  { %v928_v59 = vsel %vm70_vm1, %v752_v56, %v1448_v51  ;;  %v927_v61 = vsel %vm70_vm1, %v751_v55, %v1447_v53  ;;  %v1193_v51 = vld [vmem:[%s1985_s4] ss:$0 sm:$0xff] }
 0x204   :  { %v1451_v54 = vpop.permute.xlu1 %1450 }
 0x205   :  { %v1453_v57 = vunpack.i.h.bf16 %v1451_v54  ;;  %v1452_v58 = vunpack.i.l.bf16 %v1451_v54 }
 0x207   :  { %v943_v62 = vsel %vm375_vm2, %v927_v61, %v1452_v58  ;;  %v944_v60 = vsel %vm375_vm2, %v928_v59, %v1453_v57 }
 0x208   :  { %v956_v63 = vpack.c.bf16 %v944_v60, %v943_v62  ;;  %v1456_v0 = vpop.permute.xlu0 %1455 }
 0x209   :  { %v1458_v1 = vunpack.i.h.bf16 %v1456_v0  ;;  %v1457_v2 = vunpack.i.l.bf16 %v1456_v0 }
 0x20a   :  { %1278 = vmatmul.mubr.msk.bf16.gmra.mxu1 %vm392_vm3, %v956_v63 }
 0x20b   :  { %v930_v10 = vsel %vm70_vm1, %v754_v7, %v1458_v1  ;;  %v929_v11 = vsel %vm70_vm1, %v753_v5, %v1457_v2 }
 0x20c   :  { %v1461_v3 = vpop.permute.xlu0 %1460 }
 0x20d   :  { %v1463_v8 = vunpack.i.h.bf16 %v1461_v3  ;;  %v1462_v9 = vunpack.i.l.bf16 %v1461_v3 }
 0x20f   :  { %v945_v6 = vsel %vm375_vm2, %v929_v11, %v1462_v9  ;;  %v946_v12 = vsel %vm375_vm2, %v930_v10, %v1463_v8 }
 0x210   :  { %v957_v13 = vpack.c.bf16 %v946_v12, %v945_v6  ;;  %v1466_v15 = vpop.permute.xlu1 %1465 }
 0x211   :  { %v1468_v16 = vunpack.i.h.bf16 %v1466_v15  ;;  %v1467_v17 = vunpack.i.l.bf16 %v1466_v15 }
 0x212   :  { %1281 = vmatprep.mubr.msk.bf16.mxu1 %vm392_vm3, %v957_v13 }
 0x213   :  { %v932_v14 = vsel %vm70_vm1, %v756_v20, %v1468_v16  ;;  %v931_v24 = vsel %vm70_vm1, %v755_v19, %v1467_v17 }
 0x214   :  { %v1471_v18 = vpop.permute.xlu1 %1470 }
 0x215   :  { %v1473_v21 = vunpack.i.h.bf16 %v1471_v18  ;;  %v1472_v22 = vunpack.i.l.bf16 %v1471_v18 }
 0x217   :  { %v947_v25 = vsel %vm375_vm2, %v931_v24, %v1472_v22  ;;  %v948_v26 = vsel %vm375_vm2, %v932_v14, %v1473_v21 }
 0x218   :  { %v958_v28 = vpack.c.bf16 %v948_v26, %v947_v25  ;;  %v1476_v29 = vpop.permute.xlu0 %1475 }
 0x219   :  { %v1478_v30 = vunpack.i.h.bf16 %v1476_v29  ;;  %v1477_v31 = vunpack.i.l.bf16 %v1476_v29 }
 0x21a   :  { %1282 = vmatmul.mubr.msk.bf16.gmra.mxu1 %vm392_vm3, %v958_v28 }
 0x21b   :  { %v934_v4 = vsel %vm70_vm1, %v758_v34, %v1478_v30  ;;  %v933_v36 = vsel %vm70_vm1, %v757_v33, %v1477_v31 }
 0x21c   :  { %v1486_v32 = vpop.permute.xlu0 %1485 }
 0x21d   :  { %v1488_v35 = vunpack.i.h.bf16 %v1486_v32  ;;  %v1487_v27 = vunpack.i.l.bf16 %v1486_v32 }
 0x21f   :  { %v949_v37 = vsel %vm375_vm2, %v933_v36, %v1487_v27  ;;  %v950_v39 = vsel %vm375_vm2, %v934_v4, %v1488_v35 }
 0x220   :  { %v959_v40 = vpack.c.bf16 %v950_v39, %v949_v37  ;;  %v1481_v23 = vpop.permute.xlu1 %1480 }
 0x221   :  { %v1483_v41 = vunpack.i.h.bf16 %v1481_v23  ;;  %v1482_v42 = vunpack.i.l.bf16 %v1481_v23 }
 0x222   :  { %1285 = vmatprep.mubr.msk.bf16.mxu1 %vm392_vm3, %v959_v40 }
 0x223   :  { %v936_v47 = vsel %vm70_vm1, %v760_v44, %v1483_v41  ;;  %v935_v48 = vsel %vm70_vm1, %v759_v38, %v1482_v42 }
 0x224   :  { %v1491_v43 = vpop.permute.xlu1 %1490 }
 0x225   :  { %v1493_v45 = vunpack.i.h.bf16 %v1491_v43  ;;  %v1492_v46 = vunpack.i.l.bf16 %v1491_v43 }
 0x227   :  { %v951_v49 = vsel %vm375_vm2, %v935_v48, %v1492_v46  ;;  %v952_v50 = vsel %vm375_vm2, %v936_v47, %v1493_v45 }
 0x228   :  { %v960_v52 = vpack.c.bf16 %v952_v50, %v951_v49 }
 0x22a   :  { %1286 = vmatmul.mubr.msk.bf16.gmra.mxu1 %vm392_vm3, %v960_v52 }
 0x2ba   :  { %v1275_v53 = vpop.f32.mrf.mxu1 }
 0x2bb   :  { %v1083_v54 = vadd.f32 %v1275_v53, %v1193_v51 }
 0x2bc   :  { %v1074_v55 = vpop.f32.mrf.mxu1 }
 0x2bd   :  { %1140 = vst.msk [vmem:[%s1986_s5 + $0x10] sm:$0xff] %vm1137_vm7, %v1083_v54  ;;  %v1075_v56 = vadd.f32 %v1193_v51, %v1074_v55 }
 0x2be   :  { %v1276_v57 = vpop.f32.mrf.mxu1 }
 0x2bf   :  { %1138 = vst.msk [vmem:[%s1986_s5] sm:$0xff] %vm1137_vm7, %v1075_v56  ;;  %v1086_v58 = vadd.f32 %v1276_v57, %v1193_v51 }
 0x2c0   :  { %v1077_v59 = vpop.f32.mrf.mxu1 }
 0x2c1   :  { %1141 = vst.msk [vmem:[%s1986_s5 + $0x18] sm:$0xff] %vm1137_vm7, %v1086_v58  ;;  %v1078_v61 = vadd.f32 %v1193_v51, %v1077_v59 }
 0x2c3   :  { %1139 = vst.msk [vmem:[%s1986_s5 + $0x8] sm:$0xff] %vm1137_vm7, %v1078_v61 }
 0x2ca   :  { %v1279_v62 = vpop.f32.mrf.mxu1 }
 0x2cb   :  { %v1099_v60 = vadd.f32 %v1279_v62, %v1193_v51 }
 0x2cc   :  { %v1090_v63 = vpop.f32.mrf.mxu1 }
 0x2cd   :  { %1144 = vst.msk [vmem:[%s1986_s5 + $0x30] sm:$0xff] %vm1137_vm7, %v1099_v60  ;;  %v1091_v0 = vadd.f32 %v1193_v51, %v1090_v63 }
 0x2ce   :  { %v1280_v1 = vpop.f32.mrf.mxu1 }
 0x2cf   :  { %1142 = vst.msk [vmem:[%s1986_s5 + $0x20] sm:$0xff] %vm1137_vm7, %v1091_v0  ;;  %v1102_v2 = vadd.f32 %v1280_v1, %v1193_v51 }
 0x2d0   :  { %v1093_v3 = vpop.f32.mrf.mxu1 }
 0x2d1   :  { %1145 = vst.msk [vmem:[%s1986_s5 + $0x38] sm:$0xff] %vm1137_vm7, %v1102_v2  ;;  %v1094_v5 = vadd.f32 %v1193_v51, %v1093_v3 }
 0x2d3   :  { %1143 = vst.msk [vmem:[%s1986_s5 + $0x28] sm:$0xff] %vm1137_vm7, %v1094_v5 }
 0x2da   :  { %v1283_v7 = vpop.f32.mrf.mxu1 }
 0x2db   :  { %v1115_v8 = vadd.f32 %v1283_v7, %v1193_v51 }
 0x2dc   :  { %v1106_v9 = vpop.f32.mrf.mxu1 }
 0x2dd   :  { %1148 = vst.msk [vmem:[%s1986_s5 + $0x50] sm:$0xff] %vm1137_vm7, %v1115_v8  ;;  %v1107_v10 = vadd.f32 %v1193_v51, %v1106_v9 }
 0x2de   :  { %v1284_v11 = vpop.f32.mrf.mxu1 }
 0x2df   :  { %1146 = vst.msk [vmem:[%s1986_s5 + $0x40] sm:$0xff] %vm1137_vm7, %v1107_v10  ;;  %v1118_v6 = vadd.f32 %v1284_v11, %v1193_v51 }
 0x2e0   :  { %v1109_v12 = vpop.f32.mrf.mxu1 }
 0x2e1   :  { %1149 = vst.msk [vmem:[%s1986_s5 + $0x58] sm:$0xff] %vm1137_vm7, %v1118_v6  ;;  %v1110_v13 = vadd.f32 %v1193_v51, %v1109_v12 }
 0x2e3   :  { %1147 = vst.msk [vmem:[%s1986_s5 + $0x48] sm:$0xff] %vm1137_vm7, %v1110_v13 }
 0x2ea   :  { %v1287_v15 = vpop.f32.mrf.mxu1 }
 0x2eb   :  { %v1131_v16 = vadd.f32 %v1287_v15, %v1193_v51 }
 0x2ec   :  { %v1122_v17 = vpop.f32.mrf.mxu1 }
 0x2ed   :  { %1152 = vst.msk [vmem:[%s1986_s5 + $0x70] sm:$0xff] %vm1137_vm7, %v1131_v16  ;;  %v1123_v18 = vadd.f32 %v1193_v51, %v1122_v17 }
 0x2ee   :  { %v1288_v19 = vpop.f32.mrf.mxu1 }
 0x2ef   :  { %1150 = vst.msk [vmem:[%s1986_s5 + $0x60] sm:$0xff] %vm1137_vm7, %v1123_v18  ;;  %v1134_v20 = vadd.f32 %v1288_v19, %v1193_v51 }
 0x2f0   :  { %v1125_v21 = vpop.f32.mrf.mxu1 }
 0x2f1   :  { %1153 = vst.msk [vmem:[%s1986_s5 + $0x78] sm:$0xff] %vm1137_vm7, %v1134_v20  ;;  %v1126_v22 = vadd.f32 %v1193_v51, %v1125_v21 }
 0x2f3   :  { %1151 = vst.msk [vmem:[%s1986_s5 + $0x68] sm:$0xff] %vm1137_vm7, %v1126_v22 }

</bundles_post_ra>
